<compile_context>
chip_gen: v5e
topology: v5e:2x2
jax: 0.10.0
libtpu: 0.0.40
codegen_flags: <defaults>
</compile_context>

<pallas_src>
import jax
import jax.numpy as jnp
from jax.experimental import pallas as pl
from jax.experimental.pallas import tpu as pltpu


HALO = 8  # zero rows on each side of every batch element; supports K <= 17


def _round_up(a, b):
    return (a + b - 1) // b * b


# ---------------------------------------------------------------------------
# Pallas kernel
# ---------------------------------------------------------------------------
def _tap_conv(pad_ref, w_ref, W):
    """'same' K-tap conv over the batch-flattened window as K shifted matmuls.

    pad_ref : (W + 2*HALO, C) f32 halo scratch; window row i lives at physical
              row HALO + i; every non-interior row is zero.
    w_ref   : (K, C, Cout) bf16 per-tap weights.
    Returns (W, Cout) f32 in window coordinates.
    """
    K = w_ref.shape[0]
    P = (K - 1) // 2
    padv = pad_ref[...].astype(w_ref.dtype)      # one f32->bf16 cast per stage
    acc = jnp.dot(padv[HALO - P:HALO - P + W], w_ref[0],
                  preferred_element_type=jnp.float32)
    for k in range(1, K):                        # K in {3, 5} -> static unroll
        acc = acc + jnp.dot(padv[HALO - P + k:HALO - P + k + W], w_ref[k],
                            preferred_element_type=jnp.float32)
    return acc


def _inception_kernel(x_ref, w1_ref, w51_ref, w52_ref, w31_ref, w32_ref,
                      w33_ref, wp_ref, b51_ref, b31_ref, b32_ref, bfin_ref,
                      o_ref, padx_ref, pad5_ref, pad3a_ref, pad3b_ref):
    """Whole InceptionModule forward, batch-flattened into one row window.

    x_ref : (N, L, Cin) f32             o_ref : (N, L, 4*bc) f32
    w1    : (Cin, 4bc) bf16             1x1 branch, zero-padded cols [0:bc)
    w51   : (Cin, bc) bf16, b51 (1,bc)  5x5 branch 1x1
    w52   : (5, bc, 4bc) bf16           5x5 branch taps, cols [bc:2bc)
    w31   : (Cin, bc) bf16, b31 (1,bc)  3x3dbl branch 1x1
    w32   : (3, bc, bc) bf16, b32       3x3dbl middle conv (full width)
    w33   : (3, bc, 4bc) bf16           3x3dbl final conv, cols [2bc:3bc)
    wp    : (3, Cin, 4bc) bf16          pool branch (1x1 weight / 3 per tap),
                                        cols [3bc:4bc)
    bfin  : (1, 4bc) f32                [b1_b | b5_2_b | b3_3_b | bp_b]
    pad*  : (R, C) f32 halo scratches, R = N*S + 2*HALO, S = per-element stride
    """
    N, L, _ = x_ref.shape
    R = padx_ref.shape[0]
    W = R - 2 * HALO          # batch-flattened matmul row count
    S = W // N                # per-batch-element stride inside the window

    # ---- one-time zeroing of non-interior rows only (halos + batch gaps).
    cx = padx_ref.shape[1]
    padx_ref[pl.ds(0, HALO), :] = jnp.zeros((HALO, cx), padx_ref.dtype)
    for n in range(N):
        start = HALO + n * S + L
        size = (S - L) if n + 1 < N else (S - L + HALO)
        padx_ref[pl.ds(start, size), :] = jnp.zeros((size, cx), padx_ref.dtype)
    for ref in (pad5_ref, pad3a_ref, pad3b_ref):
        cc = ref.shape[1]
        ref[pl.ds(0, HALO), :] = jnp.zeros((HALO, cc), ref.dtype)
        ref[pl.ds(HALO + W, HALO), :] = jnp.zeros((HALO, cc), ref.dtype)

    # ---- stage all batch elements into one halo buffer (8-row zero gaps) so
    # every conv below is a single batch-flattened matmul.
    for n in range(N):
        padx_ref[pl.ds(HALO + n * S, L), :] = x_ref[n]

    # interior-row mask: 1.0 on real rows, 0.0 on gap rows, so chained convs
    # never read bias / edge garbage as halo.
    row = jax.lax.broadcasted_iota(jnp.int32, (W, 1), 0)
    interior = jnp.zeros((W, 1), jnp.bool_)
    for n in range(N):
        interior = interior | ((row >= n * S) & (row < n * S + L))
    interior = interior.astype(jnp.float32)

    # window view of x (bf16 matmul operand, cast once, reused by 3 dots).
    xw = padx_ref[pl.ds(HALO, W), :].astype(w1_ref.dtype)        # (W, Cin)

    # 1x1 branch + all final-conv biases (column groups packed at init).
    acc = (jnp.dot(xw, w1_ref[...], preferred_element_type=jnp.float32)
           + bfin_ref[...])

    # 5x5 branch: 1x1 -> 5-tap 'same' conv (cols [bc, 2bc)).
    t5 = (jnp.dot(xw, w51_ref[...], preferred_element_type=jnp.float32)
          + b51_ref[...]) * interior
    pad5_ref[pl.ds(HALO, W), :] = t5
    acc = acc + _tap_conv(pad5_ref, w52_ref, W)

    # double 3x3 branch: 1x1 -> 3-tap -> 3-tap (cols [2bc, 3bc)).
    t3 = (jnp.dot(xw, w31_ref[...], preferred_element_type=jnp.float32)
          + b31_ref[...]) * interior
    pad3a_ref[pl.ds(HALO, W), :] = t3
    t3 = (_tap_conv(pad3a_ref, w32_ref, W) + b32_ref[...]) * interior
    pad3b_ref[pl.ds(HALO, W), :] = t3
    acc = acc + _tap_conv(pad3b_ref, w33_ref, W)

    # pool branch: avg_pool1d(3,1,1) + 1x1 == 3-tap conv with taps W/3
    # (cols [3bc, 4bc)).
    acc = acc + _tap_conv(padx_ref, wp_ref, W)

    # write back interior rows only (gap rows hold scratch garbage).
    # TODO(synk): for real configs keep 4*bc a multiple of 128 so these stores
    # are lane-dense (unmasked vst) instead of masked partial stores.
    for n in range(N):
        o_ref[n] = acc[n * S:n * S + L].astype(o_ref.dtype)


# ---------------------------------------------------------------------------
# Wrapper
# ---------------------------------------------------------------------------
def inception_module_forward(x_ncl, p):
    """x_ncl: (N, in_channels, L) PyTorch NCL layout -> (N, out_channels, L)."""
    N, cin, L = x_ncl.shape
    cout = p["w1"].shape[-1]          # 4 * bc
    bc = p["w52"].shape[1]

    S = _round_up(L + HALO, 8)        # per-element stride inside the window
    W = N * S                         # batch-flattened matmul row count
    R = W + 2 * HALO                  # halo-scratch rows

    # TODO(synk): the module contract is PyTorch NCL; running the surrounding
    # model end-to-end in NLC would remove these two transpose HBM passes.
    x = jnp.transpose(x_ncl, (0, 2, 1)).astype(jnp.float32)   # NCL -> NLC

    out_nlc = pl.pallas_call(
        _inception_kernel,
        out_shape=jax.ShapeDtypeStruct((N, L, cout), jnp.float32),
        scratch_shapes=[
            pltpu.VMEM((R, cin), jnp.float32),   # staged x (1x1s + pool branch)
            pltpu.VMEM((R, bc), jnp.float32),    # 5x5 branch activations
            pltpu.VMEM((R, bc), jnp.float32),    # 3x3dbl branch, stage 1
            pltpu.VMEM((R, bc), jnp.float32),    # 3x3dbl branch, stage 2
        ],
        # TODO(synk): for production N/L/C add a (batch, row-tile) grid with
        # BlockSpecs, dimension_semantics=("parallel",...) and an explicit
        # vmem_limit_bytes so input/output DMA is pipelined against compute
        # and VMEM stays bounded on v7x (64 MiB) / v5e (16 MiB scoped default).
    )(x, p["w1"], p["w51"], p["w52"], p["w31"], p["w32"], p["w33"], p["wp"],
      p["b51"], p["b31"], p["b32"], p["bfin"])

    return jnp.transpose(out_nlc, (0, 2, 1))                   # NLC -> NCL


# ---------------------------------------------------------------------------
# Parameters: torch-style init + one-time packing into kernel layout
# ---------------------------------------------------------------------------
def _conv_init(key, cout, cin, k):
    kw, kb = jax.random.split(key)
    s = 1.0 / jnp.sqrt(cin * k)
    w = jax.random.uniform(kw, (cout, cin, k), jnp.float32, -s, s)
    b = jax.random.uniform(kb, (cout,), jnp.float32, -s, s)
    return w, b


def make_torch_params(key, in_channels, out_channels):
    bc = out_channels // 4
    ks = jax.random.split(key, 7)
    p = {}
    p["b1_w"],  p["b1_b"]  = _conv_init(ks[0], bc, in_channels, 1)
    p["b5_1_w"], p["b5_1_b"] = _conv_init(ks[1], bc, in_channels, 1)
    p["b5_2_w"], p["b5_2_b"] = _conv_init(ks[2], bc, bc, 5)
    p["b3_1_w"], p["b3_1_b"] = _conv_init(ks[3], bc, in_channels, 1)
    p["b3_2_w"], p["b3_2_b"] = _conv_init(ks[4], bc, bc, 3)
    p["b3_3_w"], p["b3_3_b"] = _conv_init(ks[5], bc, bc, 3)
    p["bp_w"],  p["bp_b"]  = _conv_init(ks[6], bc, in_channels, 1)
    return p


def pack_params(tp, out_channels):
    """One-time conversion of torch-layout weights into the fused-kernel layout.

    Tap weights -> (K, Cin, Cout) bf16; branch-final weights are zero-padded to
    their 4*bc column group; pool-branch 1x1 becomes 3 taps of W/3; all biases
    stay f32 (elementwise math is f32; only matmul operands are bf16).
    """
    bc = out_channels // 4

    max_k = max(tp[name].shape[-1]
                for name in ("b1_w", "b5_2_w", "b3_2_w", "b3_3_w", "bp_w"))
    assert max_k <= 2 * HALO + 1, "halo scratch only supports 'same' convs with K <= 17"

    bf = jnp.bfloat16

    def kl(w):  # (Cout, Cin, K) -> (K, Cin, Cout)
        return jnp.transpose(w, (2, 1, 0)).astype(jnp.float32)

    def pad_group(w, g):  # zero-pad last dim bc -> 4*bc, placing it in group g
        return jnp.pad(w, [(0, 0)] * (w.ndim - 1) + [(g * bc, (3 - g) * bc)])

    w1 = pad_group(kl(tp["b1_w"])[0], 0).astype(bf)                    # (Cin, 4bc)
    w51 = kl(tp["b5_1_w"])[0].astype(bf)                               # (Cin, bc)
    w52 = pad_group(kl(tp["b5_2_w"]), 1).astype(bf)                    # (5, bc, 4bc)
    w31 = kl(tp["b3_1_w"])[0].astype(bf)                               # (Cin, bc)
    w32 = kl(tp["b3_2_w"]).astype(bf)                                  # (3, bc, bc)
    w33 = pad_group(kl(tp["b3_3_w"]), 2).astype(bf)                    # (3, bc, 4bc)
    wp = pad_group(jnp.tile(kl(tp["bp_w"]) / 3.0, (3, 1, 1)), 3).astype(bf)  # (3, Cin, 4bc)
    bfin = jnp.concatenate(
        [tp["b1_b"], tp["b5_2_b"], tp["b3_3_b"], tp["bp_b"]]).reshape(1, 4 * bc)

    return {
        "w1": w1, "w51": w51, "w52": w52, "w31": w31, "w32": w32,
        "w33": w33, "wp": wp,
        "b51": tp["b5_1_b"].reshape(1, bc).astype(jnp.float32),
        "b31": tp["b3_1_b"].reshape(1, bc).astype(jnp.float32),
        "b32": tp["b3_2_b"].reshape(1, bc).astype(jnp.float32),
        "bfin": bfin.astype(jnp.float32),
    }


# ---------------------------------------------------------------------------
# Pure-JAX reference (mirrors the PyTorch module, f32 HIGHEST) for verification
# ---------------------------------------------------------------------------
def _reference_forward(x_ncl, tp):
    hi = jax.lax.Precision.HIGHEST
    x = jnp.transpose(x_ncl, (0, 2, 1)).astype(jnp.float32)     # (N, L, Cin)
    L = x.shape[1]

    def conv(h, w, b):
        K = w.shape[-1]
        P = (K - 1) // 2
        hp = jnp.pad(h, ((0, 0), (P, P), (0, 0)))
        acc = jnp.zeros(h.shape[:2] + (w.shape[0],), jnp.float32)
        for k in range(K):
            acc = acc + jnp.einsum("nlc,oc->nlo", hp[:, k:k + L, :],
                                   w[:, :, k], precision=hi)
        return acc + b

    b1 = conv(x, tp["b1_w"], tp["b1_b"])
    b5 = conv(conv(x, tp["b5_1_w"], tp["b5_1_b"]), tp["b5_2_w"], tp["b5_2_b"])
    b3 = conv(conv(conv(x, tp["b3_1_w"], tp["b3_1_b"]),
                   tp["b3_2_w"], tp["b3_2_b"]),
              tp["b3_3_w"], tp["b3_3_b"])
    xp = jnp.pad(x, ((0, 0), (1, 1), (0, 0)))
    pooled = (xp[:, 0:L] + xp[:, 1:L + 1] + xp[:, 2:L + 2]) / 3.0
    bp = conv(pooled, tp["bp_w"], tp["bp_b"])

    out = jnp.concatenate([b1, b5, b3, bp], axis=-1)
    return jnp.transpose(out, (0, 2, 1))


# ---------------------------------------------------------------------------
if __name__ == "__main__":
    key = jax.random.PRNGKey(0)
    k_x, k_p = jax.random.split(key)

    N, C_IN, C_OUT, L = 2, 16, 64, 16          # PyTorch NCL input (N, C, L)
    x = jax.random.normal(k_x, (N, C_IN, L), jnp.float32)

    torch_params = make_torch_params(k_p, C_IN, C_OUT)
    packed = pack_params(torch_params, C_OUT)   # one-time weight preprocessing

    fwd = jax.jit(inception_module_forward)
    out = jax.block_until_ready(fwd(x, packed))

    assert out.shape == (N, C_OUT, L), out.shape
    assert bool(jnp.all(jnp.isfinite(out)))

    ref = _reference_forward(x, torch_params)
    err = float(jnp.max(jnp.abs(out - ref)))
    # Kernel intentionally uses bf16 matmul operands (f32 accumulation) per the
    # perf review; tolerance vs the f32 HIGHEST reference is set accordingly.
    assert err < 5e-2, f"max abs err {err}"

    print("KERNEL_OK")
</pallas_src>

<mosaic_0001>
module attributes {stable_mosaic.version = 11 : i64} {
  func.func @_inception_kernel(%arg0: memref<2x16x16xf32, #tpu.memory_space<vmem>>, %arg1: memref<16x64xbf16, #tpu.memory_space<vmem>>, %arg2: memref<16x16xbf16, #tpu.memory_space<vmem>>, %arg3: memref<5x16x64xbf16, #tpu.memory_space<vmem>>, %arg4: memref<16x16xbf16, #tpu.memory_space<vmem>>, %arg5: memref<3x16x16xbf16, #tpu.memory_space<vmem>>, %arg6: memref<3x16x64xbf16, #tpu.memory_space<vmem>>, %arg7: memref<3x16x64xbf16, #tpu.memory_space<vmem>>, %arg8: memref<1x16xf32, #tpu.memory_space<vmem>>, %arg9: memref<1x16xf32, #tpu.memory_space<vmem>>, %arg10: memref<1x16xf32, #tpu.memory_space<vmem>>, %arg11: memref<1x64xf32, #tpu.memory_space<vmem>>, %arg12: memref<2x16x64xf32, #tpu.memory_space<vmem>>, %arg13: memref<64x16xf32, #tpu.memory_space<vmem>>, %arg14: memref<64x16xf32, #tpu.memory_space<vmem>>, %arg15: memref<64x16xf32, #tpu.memory_space<vmem>>, %arg16: memref<64x16xf32, #tpu.memory_space<vmem>>) attributes {dimension_semantics = [], scalar_prefetch = 0 : i64, scratch_operands = 4 : i64, tpu.core_type = #tpu.core_type<tc>} {
    %cst = arith.constant 0.000000e+00 : f32
    %0 = vector.broadcast %cst : f32 to vector<8x16xf32>
    %c0 = arith.constant 0 : index
    %c0_0 = arith.constant 0 : index
    %1 = vector.load %arg13[%c0, %c0_0] : memref<64x16xf32, #tpu.memory_space<vmem>>, vector<8x16xf32>
    tpu.vector_store %arg13[%c0, %c0_0], %0 {strides = array<i32>} : memref<64x16xf32, #tpu.memory_space<vmem>>, vector<8x16xf32>,
    %cst_1 = arith.constant 0.000000e+00 : f32
    %2 = vector.broadcast %cst_1 : f32 to vector<8x16xf32>
    %c24 = arith.constant 24 : index
    %c0_2 = arith.constant 0 : index
    %3 = vector.load %arg13[%c24, %c0_2] : memref<64x16xf32, #tpu.memory_space<vmem>>, vector<8x16xf32>
    tpu.vector_store %arg13[%c24, %c0_2], %2 {strides = array<i32>} : memref<64x16xf32, #tpu.memory_space<vmem>>, vector<8x16xf32>,
    %cst_3 = arith.constant 0.000000e+00 : f32
    %4 = vector.broadcast %cst_3 : f32 to vector<16x16xf32>
    %c48 = arith.constant 48 : index
    %c0_4 = arith.constant 0 : index
    %5 = vector.load %arg13[%c48, %c0_4] : memref<64x16xf32, #tpu.memory_space<vmem>>, vector<16x16xf32>
    tpu.vector_store %arg13[%c48, %c0_4], %4 {strides = array<i32>} : memref<64x16xf32, #tpu.memory_space<vmem>>, vector<16x16xf32>,
    %cst_5 = arith.constant 0.000000e+00 : f32
    %6 = vector.broadcast %cst_5 : f32 to vector<8x16xf32>
    %c0_6 = arith.constant 0 : index
    %c0_7 = arith.constant 0 : index
    %7 = vector.load %arg14[%c0_6, %c0_7] : memref<64x16xf32, #tpu.memory_space<vmem>>, vector<8x16xf32>
    tpu.vector_store %arg14[%c0_6, %c0_7], %6 {strides = array<i32>} : memref<64x16xf32, #tpu.memory_space<vmem>>, vector<8x16xf32>,
    %cst_8 = arith.constant 0.000000e+00 : f32
    %8 = vector.broadcast %cst_8 : f32 to vector<8x16xf32>
    %c56 = arith.constant 56 : index
    %c0_9 = arith.constant 0 : index
    %9 = vector.load %arg14[%c56, %c0_9] : memref<64x16xf32, #tpu.memory_space<vmem>>, vector<8x16xf32>
    tpu.vector_store %arg14[%c56, %c0_9], %8 {strides = array<i32>} : memref<64x16xf32, #tpu.memory_space<vmem>>, vector<8x16xf32>,
    %cst_10 = arith.constant 0.000000e+00 : f32
    %10 = vector.broadcast %cst_10 : f32 to vector<8x16xf32>
    %c0_11 = arith.constant 0 : index
    %c0_12 = arith.constant 0 : index
    %11 = vector.load %arg15[%c0_11, %c0_12] : memref<64x16xf32, #tpu.memory_space<vmem>>, vector<8x16xf32>
    tpu.vector_store %arg15[%c0_11, %c0_12], %10 {strides = array<i32>} : memref<64x16xf32, #tpu.memory_space<vmem>>, vector<8x16xf32>,
    %cst_13 = arith.constant 0.000000e+00 : f32
    %12 = vector.broadcast %cst_13 : f32 to vector<8x16xf32>
    %c56_14 = arith.constant 56 : index
    %c0_15 = arith.constant 0 : index
    %13 = vector.load %arg15[%c56_14, %c0_15] : memref<64x16xf32, #tpu.memory_space<vmem>>, vector<8x16xf32>
    tpu.vector_store %arg15[%c56_14, %c0_15], %12 {strides = array<i32>} : memref<64x16xf32, #tpu.memory_space<vmem>>, vector<8x16xf32>,
    %cst_16 = arith.constant 0.000000e+00 : f32
    %14 = vector.broadcast %cst_16 : f32 to vector<8x16xf32>
    %c0_17 = arith.constant 0 : index
    %c0_18 = arith.constant 0 : index
    %15 = vector.load %arg16[%c0_17, %c0_18] : memref<64x16xf32, #tpu.memory_space<vmem>>, vector<8x16xf32>
    tpu.vector_store %arg16[%c0_17, %c0_18], %14 {strides = array<i32>} : memref<64x16xf32, #tpu.memory_space<vmem>>, vector<8x16xf32>,
    %cst_19 = arith.constant 0.000000e+00 : f32
    %16 = vector.broadcast %cst_19 : f32 to vector<8x16xf32>
    %c56_20 = arith.constant 56 : index
    %c0_21 = arith.constant 0 : index
    %17 = vector.load %arg16[%c56_20, %c0_21] : memref<64x16xf32, #tpu.memory_space<vmem>>, vector<8x16xf32>
    tpu.vector_store %arg16[%c56_20, %c0_21], %16 {strides = array<i32>} : memref<64x16xf32, #tpu.memory_space<vmem>>, vector<8x16xf32>,
    %c0_22 = arith.constant 0 : index
    %c0_23 = arith.constant 0 : index
    %c0_24 = arith.constant 0 : index
    %18 = vector.load %arg0[%c0_22, %c0_23, %c0_24] : memref<2x16x16xf32, #tpu.memory_space<vmem>>, vector<1x16x16xf32>
    %19 = vector.shape_cast %18 : vector<1x16x16xf32> to vector<16x16xf32>
    %c8 = arith.constant 8 : index
    %c0_25 = arith.constant 0 : index
    %20 = vector.load %arg13[%c8, %c0_25] : memref<64x16xf32, #tpu.memory_space<vmem>>, vector<16x16xf32>
    tpu.vector_store %arg13[%c8, %c0_25], %19 {strides = array<i32>} : memref<64x16xf32, #tpu.memory_space<vmem>>, vector<16x16xf32>,
    %c1 = arith.constant 1 : index
    %c0_26 = arith.constant 0 : index
    %c0_27 = arith.constant 0 : index
    %21 = vector.load %arg0[%c1, %c0_26, %c0_27] : memref<2x16x16xf32, #tpu.memory_space<vmem>>, vector<1x16x16xf32>
    %22 = vector.shape_cast %21 : vector<1x16x16xf32> to vector<16x16xf32>
    %c32 = arith.constant 32 : index
    %c0_28 = arith.constant 0 : index
    %23 = vector.load %arg13[%c32, %c0_28] : memref<64x16xf32, #tpu.memory_space<vmem>>, vector<16x16xf32>
    tpu.vector_store %arg13[%c32, %c0_28], %22 {strides = array<i32>} : memref<64x16xf32, #tpu.memory_space<vmem>>, vector<16x16xf32>,
    %24 = tpu.iota {dimensions = array<i32: 0>} : vector<48x1xi32>
    %false = arith.constant false
    %25 = vector.broadcast %false : i1 to vector<48x1xi1>
    %c0_i32 = arith.constant 0 : i32
    %26 = vector.broadcast %c0_i32 : i32 to vector<48x1xi32>
    %27 = arith.cmpi sge, %24, %26 : vector<48x1xi32>
    %c16_i32 = arith.constant 16 : i32
    %28 = vector.broadcast %c16_i32 : i32 to vector<48x1xi32>
    %29 = arith.cmpi slt, %24, %28 : vector<48x1xi32>
    %30 = arith.andi %27, %29 : vector<48x1xi1>
    %31 = arith.ori %25, %30 : vector<48x1xi1>
    %c24_i32 = arith.constant 24 : i32
    %32 = vector.broadcast %c24_i32 : i32 to vector<48x1xi32>
    %33 = arith.cmpi sge, %24, %32 : vector<48x1xi32>
    %c40_i32 = arith.constant 40 : i32
    %34 = vector.broadcast %c40_i32 : i32 to vector<48x1xi32>
    %35 = arith.cmpi slt, %24, %34 : vector<48x1xi32>
    %36 = arith.andi %33, %35 : vector<48x1xi1>
    %37 = arith.ori %31, %36 : vector<48x1xi1>
    %38 = arith.extui %37 : vector<48x1xi1> to vector<48x1xi32>
    %39 = arith.sitofp %38 : vector<48x1xi32> to vector<48x1xf32>
    %c8_29 = arith.constant 8 : index
    %c0_30 = arith.constant 0 : index
    %40 = vector.load %arg13[%c8_29, %c0_30] : memref<64x16xf32, #tpu.memory_space<vmem>>, vector<48x16xf32>
    %41 = arith.truncf %40 : vector<48x16xf32> to vector<48x16xbf16>
    %c0_31 = arith.constant 0 : index
    %c0_32 = arith.constant 0 : index
    %42 = vector.load %arg1[%c0_31, %c0_32] : memref<16x64xbf16, #tpu.memory_space<vmem>>, vector<16x64xbf16>
    %cst_33 = arith.constant dense<0.000000e+00> : vector<48x64xf32>
    %43 = tpu.matmul %41, %42, %cst_33 {dimension_numbers = #tpu.dot_dimension_numbers<[1], [0], [0], [1], [0, 0, 1, 1], [], []>} : vector<48x16xbf16>, vector<16x64xbf16>, vector<48x64xf32> -> vector<48x64xf32>
    %c0_34 = arith.constant 0 : index
    %c0_35 = arith.constant 0 : index
    %44 = vector.load %arg11[%c0_34, %c0_35] : memref<1x64xf32, #tpu.memory_space<vmem>>, vector<1x64xf32>
    %45 = vector.broadcast %44 : vector<1x64xf32> to vector<48x64xf32>
    %46 = arith.addf %43, %45 : vector<48x64xf32>
    %c0_36 = arith.constant 0 : index
    %c0_37 = arith.constant 0 : index
    %47 = vector.load %arg2[%c0_36, %c0_37] : memref<16x16xbf16, #tpu.memory_space<vmem>>, vector<16x16xbf16>
    %cst_38 = arith.constant dense<0.000000e+00> : vector<48x16xf32>
    %48 = tpu.matmul %41, %47, %cst_38 {dimension_numbers = #tpu.dot_dimension_numbers<[1], [0], [0], [1], [0, 0, 1, 1], [], []>} : vector<48x16xbf16>, vector<16x16xbf16>, vector<48x16xf32> -> vector<48x16xf32>
    %c0_39 = arith.constant 0 : index
    %c0_40 = arith.constant 0 : index
    %49 = vector.load %arg8[%c0_39, %c0_40] : memref<1x16xf32, #tpu.memory_space<vmem>>, vector<1x16xf32>
    %50 = vector.broadcast %49 : vector<1x16xf32> to vector<48x16xf32>
    %51 = arith.addf %48, %50 : vector<48x16xf32>
    %52 = vector.broadcast %39 : vector<48x1xf32> to vector<48x16xf32>
    %53 = arith.mulf %51, %52 : vector<48x16xf32>
    %c8_41 = arith.constant 8 : index
    %c0_42 = arith.constant 0 : index
    %54 = vector.load %arg14[%c8_41, %c0_42] : memref<64x16xf32, #tpu.memory_space<vmem>>, vector<48x16xf32>
    tpu.vector_store %arg14[%c8_41, %c0_42], %53 {strides = array<i32>} : memref<64x16xf32, #tpu.memory_space<vmem>>, vector<48x16xf32>,
    %c0_43 = arith.constant 0 : index
    %c0_44 = arith.constant 0 : index
    %55 = vector.load %arg14[%c0_43, %c0_44] : memref<64x16xf32, #tpu.memory_space<vmem>>, vector<64x16xf32>
    %56 = arith.truncf %55 : vector<64x16xf32> to vector<64x16xbf16>
    %57 = vector.extract_strided_slice %56 {offsets = [6, 0], sizes = [48, 16], strides = [1, 1]} : vector<64x16xbf16> to vector<48x16xbf16>
    %c0_45 = arith.constant 0 : index
    %c0_46 = arith.constant 0 : index
    %c0_47 = arith.constant 0 : index
    %58 = vector.load %arg3[%c0_45, %c0_46, %c0_47] : memref<5x16x64xbf16, #tpu.memory_space<vmem>>, vector<1x16x64xbf16>
    %59 = vector.shape_cast %58 : vector<1x16x64xbf16> to vector<16x64xbf16>
    %cst_48 = arith.constant dense<0.000000e+00> : vector<48x64xf32>
    %60 = tpu.matmul %57, %59, %cst_48 {dimension_numbers = #tpu.dot_dimension_numbers<[1], [0], [0], [1], [0, 0, 1, 1], [], []>} : vector<48x16xbf16>, vector<16x64xbf16>, vector<48x64xf32> -> vector<48x64xf32>
    %61 = vector.extract_strided_slice %56 {offsets = [7, 0], sizes = [48, 16], strides = [1, 1]} : vector<64x16xbf16> to vector<48x16xbf16>
    %c1_49 = arith.constant 1 : index
    %c0_50 = arith.constant 0 : index
    %c0_51 = arith.constant 0 : index
    %62 = vector.load %arg3[%c1_49, %c0_50, %c0_51] : memref<5x16x64xbf16, #tpu.memory_space<vmem>>, vector<1x16x64xbf16>
    %63 = vector.shape_cast %62 : vector<1x16x64xbf16> to vector<16x64xbf16>
    %cst_52 = arith.constant dense<0.000000e+00> : vector<48x64xf32>
    %64 = tpu.matmul %61, %63, %cst_52 {dimension_numbers = #tpu.dot_dimension_numbers<[1], [0], [0], [1], [0, 0, 1, 1], [], []>} : vector<48x16xbf16>, vector<16x64xbf16>, vector<48x64xf32> -> vector<48x64xf32>
    %65 = arith.addf %60, %64 : vector<48x64xf32>
    %66 = vector.extract_strided_slice %56 {offsets = [8, 0], sizes = [48, 16], strides = [1, 1]} : vector<64x16xbf16> to vector<48x16xbf16>
    %c2 = arith.constant 2 : index
    %c0_53 = arith.constant 0 : index
    %c0_54 = arith.constant 0 : index
    %67 = vector.load %arg3[%c2, %c0_53, %c0_54] : memref<5x16x64xbf16, #tpu.memory_space<vmem>>, vector<1x16x64xbf16>
    %68 = vector.shape_cast %67 : vector<1x16x64xbf16> to vector<16x64xbf16>
    %cst_55 = arith.constant dense<0.000000e+00> : vector<48x64xf32>
    %69 = tpu.matmul %66, %68, %cst_55 {dimension_numbers = #tpu.dot_dimension_numbers<[1], [0], [0], [1], [0, 0, 1, 1], [], []>} : vector<48x16xbf16>, vector<16x64xbf16>, vector<48x64xf32> -> vector<48x64xf32>
    %70 = arith.addf %65, %69 : vector<48x64xf32>
    %71 = vector.extract_strided_slice %56 {offsets = [9, 0], sizes = [48, 16], strides = [1, 1]} : vector<64x16xbf16> to vector<48x16xbf16>
    %c3 = arith.constant 3 : index
    %c0_56 = arith.constant 0 : index
    %c0_57 = arith.constant 0 : index
    %72 = vector.load %arg3[%c3, %c0_56, %c0_57] : memref<5x16x64xbf16, #tpu.memory_space<vmem>>, vector<1x16x64xbf16>
    %73 = vector.shape_cast %72 : vector<1x16x64xbf16> to vector<16x64xbf16>
    %cst_58 = arith.constant dense<0.000000e+00> : vector<48x64xf32>
    %74 = tpu.matmul %71, %73, %cst_58 {dimension_numbers = #tpu.dot_dimension_numbers<[1], [0], [0], [1], [0, 0, 1, 1], [], []>} : vector<48x16xbf16>, vector<16x64xbf16>, vector<48x64xf32> -> vector<48x64xf32>
    %75 = arith.addf %70, %74 : vector<48x64xf32>
    %76 = vector.extract_strided_slice %56 {offsets = [10, 0], sizes = [48, 16], strides = [1, 1]} : vector<64x16xbf16> to vector<48x16xbf16>
    %c4 = arith.constant 4 : index
    %c0_59 = arith.constant 0 : index
    %c0_60 = arith.constant 0 : index
    %77 = vector.load %arg3[%c4, %c0_59, %c0_60] : memref<5x16x64xbf16, #tpu.memory_space<vmem>>, vector<1x16x64xbf16>
    %78 = vector.shape_cast %77 : vector<1x16x64xbf16> to vector<16x64xbf16>
    %cst_61 = arith.constant dense<0.000000e+00> : vector<48x64xf32>
    %79 = tpu.matmul %76, %78, %cst_61 {dimension_numbers = #tpu.dot_dimension_numbers<[1], [0], [0], [1], [0, 0, 1, 1], [], []>} : vector<48x16xbf16>, vector<16x64xbf16>, vector<48x64xf32> -> vector<48x64xf32>
    %80 = arith.addf %75, %79 : vector<48x64xf32>
    %81 = arith.addf %46, %80 : vector<48x64xf32>
    %c0_62 = arith.constant 0 : index
    %c0_63 = arith.constant 0 : index
    %82 = vector.load %arg4[%c0_62, %c0_63] : memref<16x16xbf16, #tpu.memory_space<vmem>>, vector<16x16xbf16>
    %cst_64 = arith.constant dense<0.000000e+00> : vector<48x16xf32>
    %83 = tpu.matmul %41, %82, %cst_64 {dimension_numbers = #tpu.dot_dimension_numbers<[1], [0], [0], [1], [0, 0, 1, 1], [], []>} : vector<48x16xbf16>, vector<16x16xbf16>, vector<48x16xf32> -> vector<48x16xf32>
    %c0_65 = arith.constant 0 : index
    %c0_66 = arith.constant 0 : index
    %84 = vector.load %arg9[%c0_65, %c0_66] : memref<1x16xf32, #tpu.memory_space<vmem>>, vector<1x16xf32>
    %85 = vector.broadcast %84 : vector<1x16xf32> to vector<48x16xf32>
    %86 = arith.addf %83, %85 : vector<48x16xf32>
    %87 = vector.broadcast %39 : vector<48x1xf32> to vector<48x16xf32>
    %88 = arith.mulf %86, %87 : vector<48x16xf32>
    %c8_67 = arith.constant 8 : index
    %c0_68 = arith.constant 0 : index
    %89 = vector.load %arg15[%c8_67, %c0_68] : memref<64x16xf32, #tpu.memory_space<vmem>>, vector<48x16xf32>
    tpu.vector_store %arg15[%c8_67, %c0_68], %88 {strides = array<i32>} : memref<64x16xf32, #tpu.memory_space<vmem>>, vector<48x16xf32>,
    %c0_69 = arith.constant 0 : index
    %c0_70 = arith.constant 0 : index
    %90 = vector.load %arg15[%c0_69, %c0_70] : memref<64x16xf32, #tpu.memory_space<vmem>>, vector<64x16xf32>
    %91 = arith.truncf %90 : vector<64x16xf32> to vector<64x16xbf16>
    %92 = vector.extract_strided_slice %91 {offsets = [7, 0], sizes = [48, 16], strides = [1, 1]} : vector<64x16xbf16> to vector<48x16xbf16>
    %c0_71 = arith.constant 0 : index
    %c0_72 = arith.constant 0 : index
    %c0_73 = arith.constant 0 : index
    %93 = vector.load %arg5[%c0_71, %c0_72, %c0_73] : memref<3x16x16xbf16, #tpu.memory_space<vmem>>, vector<1x16x16xbf16>
    %94 = vector.shape_cast %93 : vector<1x16x16xbf16> to vector<16x16xbf16>
    %cst_74 = arith.constant dense<0.000000e+00> : vector<48x16xf32>
    %95 = tpu.matmul %92, %94, %cst_74 {dimension_numbers = #tpu.dot_dimension_numbers<[1], [0], [0], [1], [0, 0, 1, 1], [], []>} : vector<48x16xbf16>, vector<16x16xbf16>, vector<48x16xf32> -> vector<48x16xf32>
    %96 = vector.extract_strided_slice %91 {offsets = [8, 0], sizes = [48, 16], strides = [1, 1]} : vector<64x16xbf16> to vector<48x16xbf16>
    %c1_75 = arith.constant 1 : index
    %c0_76 = arith.constant 0 : index
    %c0_77 = arith.constant 0 : index
    %97 = vector.load %arg5[%c1_75, %c0_76, %c0_77] : memref<3x16x16xbf16, #tpu.memory_space<vmem>>, vector<1x16x16xbf16>
    %98 = vector.shape_cast %97 : vector<1x16x16xbf16> to vector<16x16xbf16>
    %cst_78 = arith.constant dense<0.000000e+00> : vector<48x16xf32>
    %99 = tpu.matmul %96, %98, %cst_78 {dimension_numbers = #tpu.dot_dimension_numbers<[1], [0], [0], [1], [0, 0, 1, 1], [], []>} : vector<48x16xbf16>, vector<16x16xbf16>, vector<48x16xf32> -> vector<48x16xf32>
    %100 = arith.addf %95, %99 : vector<48x16xf32>
    %101 = vector.extract_strided_slice %91 {offsets = [9, 0], sizes = [48, 16], strides = [1, 1]} : vector<64x16xbf16> to vector<48x16xbf16>
    %c2_79 = arith.constant 2 : index
    %c0_80 = arith.constant 0 : index
    %c0_81 = arith.constant 0 : index
    %102 = vector.load %arg5[%c2_79, %c0_80, %c0_81] : memref<3x16x16xbf16, #tpu.memory_space<vmem>>, vector<1x16x16xbf16>
    %103 = vector.shape_cast %102 : vector<1x16x16xbf16> to vector<16x16xbf16>
    %cst_82 = arith.constant dense<0.000000e+00> : vector<48x16xf32>
    %104 = tpu.matmul %101, %103, %cst_82 {dimension_numbers = #tpu.dot_dimension_numbers<[1], [0], [0], [1], [0, 0, 1, 1], [], []>} : vector<48x16xbf16>, vector<16x16xbf16>, vector<48x16xf32> -> vector<48x16xf32>
    %105 = arith.addf %100, %104 : vector<48x16xf32>
    %c0_83 = arith.constant 0 : index
    %c0_84 = arith.constant 0 : index
    %106 = vector.load %arg10[%c0_83, %c0_84] : memref<1x16xf32, #tpu.memory_space<vmem>>, vector<1x16xf32>
    %107 = vector.broadcast %106 : vector<1x16xf32> to vector<48x16xf32>
    %108 = arith.addf %105, %107 : vector<48x16xf32>
    %109 = vector.broadcast %39 : vector<48x1xf32> to vector<48x16xf32>
    %110 = arith.mulf %108, %109 : vector<48x16xf32>
    %c8_85 = arith.constant 8 : index
    %c0_86 = arith.constant 0 : index
    %111 = vector.load %arg16[%c8_85, %c0_86] : memref<64x16xf32, #tpu.memory_space<vmem>>, vector<48x16xf32>
    tpu.vector_store %arg16[%c8_85, %c0_86], %110 {strides = array<i32>} : memref<64x16xf32, #tpu.memory_space<vmem>>, vector<48x16xf32>,
    %c0_87 = arith.constant 0 : index
    %c0_88 = arith.constant 0 : index
    %112 = vector.load %arg16[%c0_87, %c0_88] : memref<64x16xf32, #tpu.memory_space<vmem>>, vector<64x16xf32>
    %113 = arith.truncf %112 : vector<64x16xf32> to vector<64x16xbf16>
    %114 = vector.extract_strided_slice %113 {offsets = [7, 0], sizes = [48, 16], strides = [1, 1]} : vector<64x16xbf16> to vector<48x16xbf16>
    %c0_89 = arith.constant 0 : index
    %c0_90 = arith.constant 0 : index
    %c0_91 = arith.constant 0 : index
    %115 = vector.load %arg6[%c0_89, %c0_90, %c0_91] : memref<3x16x64xbf16, #tpu.memory_space<vmem>>, vector<1x16x64xbf16>
    %116 = vector.shape_cast %115 : vector<1x16x64xbf16> to vector<16x64xbf16>
    %cst_92 = arith.constant dense<0.000000e+00> : vector<48x64xf32>
    %117 = tpu.matmul %114, %116, %cst_92 {dimension_numbers = #tpu.dot_dimension_numbers<[1], [0], [0], [1], [0, 0, 1, 1], [], []>} : vector<48x16xbf16>, vector<16x64xbf16>, vector<48x64xf32> -> vector<48x64xf32>
    %118 = vector.extract_strided_slice %113 {offsets = [8, 0], sizes = [48, 16], strides = [1, 1]} : vector<64x16xbf16> to vector<48x16xbf16>
    %c1_93 = arith.constant 1 : index
    %c0_94 = arith.constant 0 : index
    %c0_95 = arith.constant 0 : index
    %119 = vector.load %arg6[%c1_93, %c0_94, %c0_95] : memref<3x16x64xbf16, #tpu.memory_space<vmem>>, vector<1x16x64xbf16>
    %120 = vector.shape_cast %119 : vector<1x16x64xbf16> to vector<16x64xbf16>
    %cst_96 = arith.constant dense<0.000000e+00> : vector<48x64xf32>
    %121 = tpu.matmul %118, %120, %cst_96 {dimension_numbers = #tpu.dot_dimension_numbers<[1], [0], [0], [1], [0, 0, 1, 1], [], []>} : vector<48x16xbf16>, vector<16x64xbf16>, vector<48x64xf32> -> vector<48x64xf32>
    %122 = arith.addf %117, %121 : vector<48x64xf32>
    %123 = vector.extract_strided_slice %113 {offsets = [9, 0], sizes = [48, 16], strides = [1, 1]} : vector<64x16xbf16> to vector<48x16xbf16>
    %c2_97 = arith.constant 2 : index
    %c0_98 = arith.constant 0 : index
    %c0_99 = arith.constant 0 : index
    %124 = vector.load %arg6[%c2_97, %c0_98, %c0_99] : memref<3x16x64xbf16, #tpu.memory_space<vmem>>, vector<1x16x64xbf16>
    %125 = vector.shape_cast %124 : vector<1x16x64xbf16> to vector<16x64xbf16>
    %cst_100 = arith.constant dense<0.000000e+00> : vector<48x64xf32>
    %126 = tpu.matmul %123, %125, %cst_100 {dimension_numbers = #tpu.dot_dimension_numbers<[1], [0], [0], [1], [0, 0, 1, 1], [], []>} : vector<48x16xbf16>, vector<16x64xbf16>, vector<48x64xf32> -> vector<48x64xf32>
    %127 = arith.addf %122, %126 : vector<48x64xf32>
    %128 = arith.addf %81, %127 : vector<48x64xf32>
    %c0_101 = arith.constant 0 : index
    %c0_102 = arith.constant 0 : index
    %129 = vector.load %arg13[%c0_101, %c0_102] : memref<64x16xf32, #tpu.memory_space<vmem>>, vector<64x16xf32>
    %130 = arith.truncf %129 : vector<64x16xf32> to vector<64x16xbf16>
    %131 = vector.extract_strided_slice %130 {offsets = [7, 0], sizes = [48, 16], strides = [1, 1]} : vector<64x16xbf16> to vector<48x16xbf16>
    %c0_103 = arith.constant 0 : index
    %c0_104 = arith.constant 0 : index
    %c0_105 = arith.constant 0 : index
    %132 = vector.load %arg7[%c0_103, %c0_104, %c0_105] : memref<3x16x64xbf16, #tpu.memory_space<vmem>>, vector<1x16x64xbf16>
    %133 = vector.shape_cast %132 : vector<1x16x64xbf16> to vector<16x64xbf16>
    %cst_106 = arith.constant dense<0.000000e+00> : vector<48x64xf32>
    %134 = tpu.matmul %131, %133, %cst_106 {dimension_numbers = #tpu.dot_dimension_numbers<[1], [0], [0], [1], [0, 0, 1, 1], [], []>} : vector<48x16xbf16>, vector<16x64xbf16>, vector<48x64xf32> -> vector<48x64xf32>
    %135 = vector.extract_strided_slice %130 {offsets = [8, 0], sizes = [48, 16], strides = [1, 1]} : vector<64x16xbf16> to vector<48x16xbf16>
    %c1_107 = arith.constant 1 : index
    %c0_108 = arith.constant 0 : index
    %c0_109 = arith.constant 0 : index
    %136 = vector.load %arg7[%c1_107, %c0_108, %c0_109] : memref<3x16x64xbf16, #tpu.memory_space<vmem>>, vector<1x16x64xbf16>
    %137 = vector.shape_cast %136 : vector<1x16x64xbf16> to vector<16x64xbf16>
    %cst_110 = arith.constant dense<0.000000e+00> : vector<48x64xf32>
    %138 = tpu.matmul %135, %137, %cst_110 {dimension_numbers = #tpu.dot_dimension_numbers<[1], [0], [0], [1], [0, 0, 1, 1], [], []>} : vector<48x16xbf16>, vector<16x64xbf16>, vector<48x64xf32> -> vector<48x64xf32>
    %139 = arith.addf %134, %138 : vector<48x64xf32>
    %140 = vector.extract_strided_slice %130 {offsets = [9, 0], sizes = [48, 16], strides = [1, 1]} : vector<64x16xbf16> to vector<48x16xbf16>
    %c2_111 = arith.constant 2 : index
    %c0_112 = arith.constant 0 : index
    %c0_113 = arith.constant 0 : index
    %141 = vector.load %arg7[%c2_111, %c0_112, %c0_113] : memref<3x16x64xbf16, #tpu.memory_space<vmem>>, vector<1x16x64xbf16>
    %142 = vector.shape_cast %141 : vector<1x16x64xbf16> to vector<16x64xbf16>
    %cst_114 = arith.constant dense<0.000000e+00> : vector<48x64xf32>
    %143 = tpu.matmul %140, %142, %cst_114 {dimension_numbers = #tpu.dot_dimension_numbers<[1], [0], [0], [1], [0, 0, 1, 1], [], []>} : vector<48x16xbf16>, vector<16x64xbf16>, vector<48x64xf32> -> vector<48x64xf32>
    %144 = arith.addf %139, %143 : vector<48x64xf32>
    %145 = arith.addf %128, %144 : vector<48x64xf32>
    %146 = vector.extract_strided_slice %145 {offsets = [0, 0], sizes = [16, 64], strides = [1, 1]} : vector<48x64xf32> to vector<16x64xf32>
    %c0_115 = arith.constant 0 : index
    %c0_116 = arith.constant 0 : index
    %c0_117 = arith.constant 0 : index
    %147 = vector.load %arg12[%c0_115, %c0_116, %c0_117] : memref<2x16x64xf32, #tpu.memory_space<vmem>>, vector<1x16x64xf32>
    %148 = vector.shape_cast %147 : vector<1x16x64xf32> to vector<16x64xf32>
    %149 = vector.shape_cast %146 : vector<16x64xf32> to vector<1x16x64xf32>
    tpu.vector_store %arg12[%c0_115, %c0_116, %c0_117], %149 {strides = array<i32>} : memref<2x16x64xf32, #tpu.memory_space<vmem>>, vector<1x16x64xf32>,
    %150 = vector.extract_strided_slice %145 {offsets = [24, 0], sizes = [16, 64], strides = [1, 1]} : vector<48x64xf32> to vector<16x64xf32>
    %c1_118 = arith.constant 1 : index
    %c0_119 = arith.constant 0 : index
    %c0_120 = arith.constant 0 : index
    %151 = vector.load %arg12[%c1_118, %c0_119, %c0_120] : memref<2x16x64xf32, #tpu.memory_space<vmem>>, vector<1x16x64xf32>
    %152 = vector.shape_cast %151 : vector<1x16x64xf32> to vector<16x64xf32>
    %153 = vector.shape_cast %150 : vector<16x64xf32> to vector<1x16x64xf32>
    tpu.vector_store %arg12[%c1_118, %c0_119, %c0_120], %153 {strides = array<i32>} : memref<2x16x64xf32, #tpu.memory_space<vmem>>, vector<1x16x64xf32>,
    return
  }
}

</mosaic_0001>

<bundles_post_ra>
// kernel: inception_module_forward.1
= control target key start
LH: loop header
LB: loop body
LE: loop exit
PB: predicated region body
PF: predicated region fallthrough
CT: control target
= control target key end

     0   :  { %17 = vsyncpa [#allocation7], 0  ;;  %s2131_s0 = inlined_call_operand.vmem [shape: f32[2,16,16], index: 0, kind: input, shape index: {}]   ;;  %s2132_s1 = inlined_call_operand.vmem [shape: bf16[16,64], index: 1, kind: input, shape index: {}]   ;;  %s2133_s2 = inlined_call_operand.hbm [shape: bf16[16,16], index: 2, kind: input, shape index: {}]   ;;  %s2134_s3 = inlined_call_operand.vmem [shape: bf16[5,16,64], index: 3, kind: input, shape index: {}]   ;;  %s2135_s4 = inlined_call_operand.hbm [shape: bf16[16,16], index: 4, kind: input, shape index: {}]   ;;  %s2136_s5 = inlined_call_operand.vmem [shape: bf16[3,16,16], index: 5, kind: input, shape index: {}]   ;;  %s2137_s6 = inlined_call_operand.hbm [shape: bf16[3,16,64], index: 6, kind: input, shape index: {}]   ;;  %s2138_s7 = inlined_call_operand.hbm [shape: bf16[3,16,64], index: 7, kind: input, shape index: {}]   ;;  %s2139_s8 = inlined_call_operand.vmem [shape: f32[1,16], index: 8, kind: input, shape index: {}]   ;;  %s2140_s9 = inlined_call_operand.vmem [shape: f32[1,16], index: 9, kind: input, shape index: {}]   ;;  %s2141_s10 = inlined_call_operand.hbm [shape: f32[1,16], index: 10, kind: input, shape index: {}]   ;;  %s2142_s11 = inlined_call_operand.hbm [shape: f32[1,64], index: 11, kind: input, shape index: {}]   ;;  %s2143_s12 = inlined_call_operand.hbm [shape: f32[2,16,64], index: 12, kind: output, shape index: {}]  }
   0x1   :  { %18 = vsyncpa [#allocation10], 0 }
   0x2   :  { %19 = vsyncpa [#allocation13], 0 }
   0x3   :  { %20 = vsyncpa [#allocation16], 0 }
   0x4   :  { %21 = vsyncpa [#allocation8], 0  ;;  %s45_s23 = sshll.u32 %s2135_s4, 4  ;;  %s1776_s24 = smov [#allocation9]   ;;  %s46_s23 = int_to_ptr.hbm [resolvable:$true] %s45_s23 }
   0x5   :  { %s47_s25 = sshll.u32 %s1776_s24, 4  ;;  %s73_s28 = sshll.u32 %s2138_s7, 4  ;;  %s48_s25 = int_to_ptr.vmem [resolvable:$true] %s47_s25  ;;  %s74_s28 = int_to_ptr.hbm [resolvable:$true] %s73_s28 }
   0x6   :  { %s1777_s29 = smov 64   ;;  %s1778_s30 = smov 4  }
   0x7   :  { %53 = dma.hbm_to_vmem [thread:$0]  %s46_s23, 128, %s48_s25, [#allocation10], %s1777_s29, %s1777_s29, %s1778_s30  }
   0x8   :  { %s1779_s13 = smov [#allocation12]   ;;  %s30_s17 = sshll.u32 %s2133_s2, 4  ;;  %s31_s17 = int_to_ptr.hbm [resolvable:$true] %s30_s17 }
   0x9   :  { %s75_s14 = sshll.u32 %s1779_s13, 4  ;;  %s60_s19 = sshll.u32 %s2137_s6, 4  ;;  %s76_s14 = int_to_ptr.vmem [resolvable:$true] %s75_s14  ;;  %s61_s19 = int_to_ptr.hbm [resolvable:$true] %s60_s19 }
   0xa   :  { %81 = dma.hbm_to_vmem [thread:$0]  %s74_s28, 384, %s76_s14, [#allocation13], %s1777_s29, %s1777_s29, %s1778_s30  }
   0xb   :  { %s1780_s20 = smov [#allocation6]   ;;  %s1781_s7 = smov [#allocation11]  }
   0xc   :  { %s32_s21 = sshll.u32 %s1780_s20, 4  ;;  %s62_s22 = sshll.u32 %s1781_s7, 4  ;;  %s33_s21 = int_to_ptr.vmem [resolvable:$true] %s32_s21  ;;  %s63_s22 = int_to_ptr.vmem [resolvable:$true] %s62_s22 }
   0xd   :  { %38 = dma.hbm_to_vmem [thread:$0]  %s31_s17, 128, %s33_s21, [#allocation7], %s1777_s29, %s1777_s29, %s1778_s30  }
   0xe   :  { %s91_s25 = sshll.u32 %s2141_s10, 4  ;;  %s102_s27 = sshll.u32 %s2142_s11, 4  ;;  %s92_s25 = int_to_ptr.hbm [resolvable:$true] %s91_s25  ;;  %s103_s27 = int_to_ptr.hbm [resolvable:$true] %s102_s27 }
   0xf   :  { %68 = dma.hbm_to_vmem [thread:$0]  %s61_s19, 384, %s63_s22, [#allocation10], %s1777_s29, %s1777_s29, %s1778_s30  }
  0x10   :  { %s1782_s28 = smov [#allocation14]   ;;  %s1783_s13 = smov [#allocation15]  }
  0x11   :  { %s93_s6 = sshll.u32 %s1782_s28, 4  ;;  %s104_s14 = sshll.u32 %s1783_s13, 4  ;;  %s94_s6 = int_to_ptr.vmem [resolvable:$true] %s93_s6  ;;  %s105_s14 = int_to_ptr.vmem [resolvable:$true] %s104_s14 }
  0x12   :  { %96 = dma.hbm_to_vmem [thread:$0]  %s92_s25, 16, %s94_s6, [#allocation13]  }
  0x13   :  { %107 = dma.hbm_to_vmem [thread:$0]  %s103_s27, 16, %s105_s14, [#allocation16]  }
  0x14   :  { %1766 = dma.done.wait [#allocation7], 128  }
  0x15   :  { %1767 = vsyncadd [#allocation7], 4294967168 }
  0x16   :  { %1768 = dma.done.wait [#allocation10], 512  }
  0x17   :  { %1769 = vsyncadd [#allocation10], 4294966784 }
  0x18   :  { %1770 = dma.done.wait [#allocation13], 400  }
  0x19   :  { %1771 = vsyncadd [#allocation13], 4294966896 }
  0x1a   :  { %1772 = dma.done.wait [#allocation16], 16  }
  0x1b   :  { %1773 = vsyncadd [#allocation16], 4294967280  ;;  %vm133_vm0 = vcmask 130048   ;;  %v1784_v0 = vmov 0.0   ;;  %v1563_v1 = vld [vmem:[%s2132_s1] sm:$0xff]  ;;  %v1430_v2 = vld [vmem:[%s2131_s0 + $0x10] sm:$0xff] }
  0x1c   :  { %135 = vst.msk [vmem:[#allocation2 + $0x18] sm:$0xff] %vm133_vm0, %v1784_v0  ;;  %v1564_v3 = vld [vmem:[#allocation6] sm:$0xff]  ;;  %1580 = vmatpush.bf16.msra.mxu1 %v1563_v1  ;;  %251 = vmatpush.bf16.msra.mxu0 %v1563_v1  ;;  %v145_v5 = vld [vmem:[%s2131_s0 + $0x8] sm:$0xff]  ;;  %v1431_v9 = vld [vmem:[%s2131_s0 + $0x18] sm:$0xff]  ;;  %vm426_vm1 = vcmask 1044480   ;;  %vm594_vm4 = vcmask 1046528  }
  0x1d   :  { %134 = vst.msk [vmem:[#allocation2] sm:$0xff] %vm133_vm0, %v1784_v0  ;;  %v144_v4 = vld [vmem:[%s2131_s0] sm:$0xff]  ;;  %1581 = vmatpush.bf16.msra.mxu2 %v1563_v1  ;;  %v1567_v17 = vld [vmem:[%s2134_s3 + $0x10] sm:$0xff]  ;;  %v1566_v23 = vld [vmem:[%s2134_s3 + $0x8] sm:$0xff]  ;;  %vm353_vm2 = vsmask.f32 4352 }
  0x1e   :  { %136 = vst.msk [vmem:[#allocation2 + $0x30] sm:$0xff] %vm133_vm0, %v1784_v0  ;;  %v1932_v19 = vld [vmem:[%s2139_s8] ss:$0 sm:$0xff]  ;;  %v1570_v24 = vld [vmem:[#allocation9] sm:$0xff]  ;;  %v1568_v27 = vld [vmem:[%s2134_s3 + $0x18] sm:$0xff]  ;;  %vm1402_vm5 = vcmask 523264  }
  0x1f   :  { %137 = vst.msk [vmem:[#allocation2 + $0x38] sm:$0xff] %vm133_vm0, %v1784_v0  ;;  %v1565_v22 = vld [vmem:[%s2134_s3] sm:$0xff]  ;;  %vm524_vm3 = vsmask.f32 7424  ;;  %s1414_s15 = sshll.u32 %s2143_s12, 4  ;;  %s1786_s16 = smov 128   ;;  %s1415_s15 = int_to_ptr.hbm [resolvable:$true] %s1414_s15 }
  0x20   :  { %138 = vst.msk [vmem:[#allocation3] sm:$0xff] %vm133_vm0, %v1784_v0  ;;  %285 = vmatpush.bf16.msrb.mxu1 %v1564_v3  ;;  %499 = vmatpush.bf16.msrb.mxu0 %v1567_v17  ;;  %s1787_s1 = smov 8  }
  0x21   :  { %139 = vst.msk [vmem:[#allocation3 + $0x38] sm:$0xff] %vm133_vm0, %v1784_v0  ;;  %456 = vmatpush.bf16.msra.mxu3 %v1565_v22  ;;  %411 = vmatpush.bf16.msrb.mxu2 %v1566_v23 }
  0x22   :  { %140 = vst.msk [vmem:[#allocation4] sm:$0xff] %vm133_vm0, %v1784_v0 }
  0x23   :  { %151 = vst.msk [vmem:[#allocation2 + $0x20] sm:$0xff] %vm133_vm0, %v1430_v2  ;;  %v216_v6 = vld [vmem:[#allocation2 + $0x18] sm:$0xff] }
  0x24   :  { %141 = vst.msk [vmem:[#allocation4 + $0x38] sm:$0xff] %vm133_vm0, %v1784_v0 }
  0x25   :  { %142 = vst.msk [vmem:[#allocation5] sm:$0xff] %vm133_vm0, %v1784_v0  ;;  %v219_v13 = vld [vmem:[#allocation2 + $0x30] sm:$0xff]  ;;  %666 = vmatpush.bf16.msrb.mxu3 %v1570_v24 }
  0x26   :  { %143 = vst.msk [vmem:[#allocation5 + $0x38] sm:$0xff] %vm133_vm0, %v1784_v0 }
  0x27   :  { %146 = vst.msk [vmem:[#allocation2 + $0x8] sm:$0xff] %vm133_vm0, %v144_v4  ;;  %v314_v29 = vld [vmem:[#allocation3] sm:$0xff] }
  0x28   :  { %147 = vst.msk [vmem:[#allocation2 + $0x10] sm:$0xff] %vm133_vm0, %v145_v5  ;;  %v322_v34 = vpack.c.bf16 %v314_v29, %v314_v29 }
  0x29   :  { %152 = vst.msk [vmem:[#allocation2 + $0x28] sm:$0xff] %vm133_vm0, %v1431_v9 }
  0x2a   :  { %v217_v7 = vld [vmem:[#allocation2 + $0x20] sm:$0xff]  ;;  %v342_v39 = vunpack.c.l.b16 %v322_v34 }
  0x2b   :  { %v1896_v8 = vpack.c.bf16 %v217_v7, %v216_v6 }
  0x2d   :  { %1437 = vmatmul.msk.bf16.vlgmr.msra.gmra.mxu1 %vm133_vm0, %v1896_v8 }
  0x2e   :  { %v1903_v10 = vld [vmem:[#allocation2 + $0x8] sm:$0xff]  ;;  %572 = vmatpush.bf16.msra.mxu1 %v1568_v27 }
  0x2f   :  { %v1906_v11 = vld [vmem:[#allocation2 + $0x10] sm:$0xff] }
  0x30   :  { %v1910_v12 = vpack.c.bf16 %v1906_v11, %v1903_v10  ;;  %v218_v14 = vld [vmem:[#allocation2 + $0x28] sm:$0xff] }
  0x31   :  { %v1914_v15 = vpack.c.bf16 %v219_v13, %v218_v14 }
  0x32   :  { %1436 = vmatmul.msk.bf16.vlgmr.msra.gmra.mxu0 %vm133_vm0, %v1910_v12 }
  0x33   :  { %1438 = vmatmul.msk.bf16.vlgmr.msra.gmra.mxu2 %vm133_vm0, %v1914_v15 }
  0x3d   :  { %1443 = vmatmul.msk.bf16.vlgmr.msrb.gmra.mxu1 %vm133_vm0, %v1910_v12 }
  0x4d   :  { %1444 = vmatmul.msk.bf16.gmra.mxu1 %vm133_vm0, %v1896_v8 }
  0x5d   :  { %1445 = vmatmul.msk.bf16.gmra.mxu1 %vm133_vm0, %v1914_v15 }
  0xaa   :  { %v258_v16 = vpop.f32.mrf.mxu1 }
  0xb2   :  { %v1927_v18 = vpop.f32.mrf.mxu1 }
  0xba   :  { %v287_v20 = vpop.f32.mrf.mxu1 }
  0xbb   :  { %v288_v21 = vadd.f32 %v1932_v19, %v287_v20 }
  0xbd   :  { %308 = vst.msk [vmem:[#allocation3 + $0x8] sm:$0xff] %vm133_vm0, %v288_v21 }
  0xc2   :  { %v289_v25 = vpop.f32.mrf.mxu1 }
  0xc3   :  { %v290_v26 = vadd.f32 %v1932_v19, %v289_v25 }
  0xc4   :  { %v315_v28 = vld [vmem:[#allocation3 + $0x8] sm:$0xff] }
  0xc5   :  { %309 = vst.msk [vmem:[#allocation3 + $0x10] sm:$0xff] %vm133_vm0, %v290_v26  ;;  %v323_v32 = vpack.c.bf16 %v315_v28, %v315_v28 }
  0xc7   :  { %v343_v37 = vunpack.c.l.b16 %v323_v32 }
  0xc9   :  { %v349_v43 = vpack.c.b16 %v343_v37, %v342_v39 }
  0xca   :  { %v292_v30 = vpop.f32.mrf.mxu1 }
  0xcb   :  { %v293_v31 = vadd.f32 %v1932_v19, %v292_v30  ;;  %v355_v46 = vshrl.u32 %v349_v43, 16  ;;  %v358_v47 = vshll.u32 %v349_v43, 16  ;;  %v427_v52 = vrot.slane %v349_v43, 3 }
  0xcc   :  { %v316_v33 = vld [vmem:[#allocation3 + $0x10] sm:$0xff] }
  0xcd   :  { %v304_v35 = vmul.f32 0.0, %v293_v31  ;;  %v324_v36 = vpack.c.bf16 %v316_v33, %v316_v33  ;;  %v357_v54 = vrot.slane %v355_v46, 3  ;;  %v360_v55 = vrot.slane %v358_v47, 4  ;;  %v1569_v33 = vld [vmem:[%s2134_s3 + $0x20] sm:$0xff] }
  0xce   :  { %624 = vmatpush.bf16.msra.mxu2 %v1569_v33  ;;  %v1571_v33 = vld [vmem:[%s2136_s5] sm:$0xff] }
  0xcf   :  { %310 = vst.msk [vmem:[#allocation3 + $0x18] sm:$0xff] %vm133_vm0, %v304_v35  ;;  %v344_v38 = vunpack.c.l.b16 %v324_v36  ;;  %v361_v2 = vor.u32 %v360_v55, %v357_v54  ;;  %833 = vmatpush.bf16.msrb.mxu1 %v1571_v33 }
  0xd1   :  { %v1949_v40 = vpack.c.b16 %v344_v38, %v343_v37 }
  0xd2   :  { %v294_v41 = vpop.f32.mrf.mxu1 }
  0xd3   :  { %v295_v42 = vadd.f32 %v1932_v19, %v294_v41  ;;  %1468 = vmatmul.msk.bf16.vlgmr.msrb.gmra.mxu0 %vm133_vm0, %v1949_v40  ;;  %v527_v56 = vshll.u32 %v1949_v40, 16  ;;  %v525_v9 = vshrl.u32 %v1949_v40, 16 }
  0xd5   :  { %311 = vst.msk [vmem:[#allocation3 + $0x20] sm:$0xff] %vm133_vm0, %v295_v42  ;;  %v529_v4 = vrot.slane %v527_v56, 1 }
  0xd6   :  { %v317_v44 = vld [vmem:[#allocation3 + $0x18] sm:$0xff] }
  0xd7   :  { %v325_v45 = vpack.c.bf16 %v317_v44, %v317_v44  ;;  %v530_v17 = vor.u32 %v529_v4, %v525_v9  ;;  %v253_v4 = vpop.f32.mrf.mxu0 }
  0xd9   :  { %v345_v48 = vunpack.c.l.b16 %v325_v45 }
  0xda   :  { %v297_v49 = vpop.f32.mrf.mxu1 }
  0xdb   :  { %v298_v50 = vadd.f32 %v1932_v19, %v297_v49  ;;  %v350_v51 = vpack.c.b16 %v345_v48, %v344_v38  ;;  %v321_v38 = vld [vmem:[#allocation3 + $0x38] sm:$0xff] }
  0xdc   :  { %v318_v53 = vld [vmem:[#allocation3 + $0x20] sm:$0xff]  ;;  %v329_v42 = vpack.c.bf16 %v321_v38, %v321_v38 }
  0xdd   :  { %312 = vst.msk [vmem:[#allocation3 + $0x28] sm:$0xff] %vm133_vm0, %v298_v50  ;;  %v428_v57 = vrot.slane %v350_v51, 3  ;;  %v326_v58 = vpack.c.bf16 %v318_v53, %v318_v53  ;;  %v363_v59 = vshrl.u32 %v350_v51, 16  ;;  %v366_v60 = vshll.u32 %v350_v51, 16 }
  0xde   :  { %v522_v51 = vunpack.c.l.b16 %v329_v42 }
  0xdf   :  { %v429_v61 = vsel %vm426_vm1, %v427_v52, %v428_v57  ;;  %v346_v62 = vunpack.c.l.b16 %v326_v58  ;;  %v365_v63 = vrot.slane %v363_v59, 3  ;;  %v368_v0 = vrot.slane %v366_v60, 4 }
  0xe0   :  { %1459 = vmatmul.msk.bf16.vlgmr.msra.gmra.mxu3 %vm133_vm0, %v429_v61  ;;  %v523_v54 = vpack.c.b16 %v522_v51, %v522_v51 }
  0xe1   :  { %v1960_v1 = vpack.c.b16 %v346_v62, %v345_v48  ;;  %v369_v3 = vor.u32 %v368_v0, %v365_v63 }
  0xe2   :  { %v299_v5 = vpop.f32.mrf.mxu1  ;;  %v546_v55 = vshll.u32 %v523_v54, 16 }
  0xe3   :  { %v300_v6 = vadd.f32 %v1932_v19, %v299_v5  ;;  %1469 = vmatmul.msk.bf16.gmra.mxu0 %vm133_vm0, %v1960_v1  ;;  %v370_v7 = vsel %vm353_vm2, %v361_v2, %v369_v3  ;;  %v531_v13 = vshll.u32 %v1960_v1, 16  ;;  %v535_v39 = vshrl.u32 %v1960_v1, 16  ;;  %v2002_v5 = vpop.f32.mrf.mxu0 }
  0xe4   :  { %1452 = vmatmul.msk.bf16.vlgmr.msrb.gmra.mxu2 %vm133_vm0, %v370_v7  ;;  %v319_v14 = vld [vmem:[#allocation3 + $0x28] sm:$0xff]  ;;  %v548_v59 = vrot.slane %v546_v55, 1  ;;  %v596_v61 = vrot.slane %v1960_v1, 1  ;;  %v1999_v1 = vpop.f32.mrf.mxu2 }
  0xe5   :  { %v307_v16 = vmul.f32 0.0, %v300_v6  ;;  %v533_v20 = vrot.slane %v531_v13, 1  ;;  %v327_v21 = vpack.c.bf16 %v319_v14, %v319_v14 }
  0xe7   :  { %313 = vst.msk [vmem:[#allocation3 + $0x30] sm:$0xff] %vm133_vm0, %v307_v16  ;;  %v534_v19 = vsel %vm524_vm3, %v530_v17, %v533_v20  ;;  %v347_v22 = vunpack.c.l.b16 %v327_v21  ;;  %v537_v43 = vor.u32 %v535_v39, %v533_v20 }
  0xe8   :  { %1477 = vmatmul.msk.bf16.vlgmr.msra.gmra.mxu1 %vm133_vm0, %v534_v19 }
  0xe9   :  { %v351_v23 = vpack.c.b16 %v347_v22, %v346_v62  ;;  %v595_v62 = vrot.slane %v1949_v40, 1 }
  0xeb   :  { %v430_v24 = vrot.slane %v351_v23, 3  ;;  %v372_v25 = vshrl.u32 %v351_v23, 16  ;;  %v375_v26 = vshll.u32 %v351_v23, 16  ;;  %v597_v63 = vsel %vm594_vm4, %v595_v62, %v596_v61 }
  0xec   :  { %v264_v40 = vpop.f32.mrf.mxu2 }
  0xed   :  { %v374_v27 = vrot.slane %v372_v25, 3  ;;  %v377_v28 = vrot.slane %v375_v26, 4  ;;  %v431_v30 = vsel %vm426_vm1, %v428_v57, %v430_v24 }
  0xee   :  { %v320_v29 = vld [vmem:[#allocation3 + $0x30] sm:$0xff] }
  0xef   :  { %v378_v31 = vor.u32 %v377_v28, %v374_v27  ;;  %v328_v32 = vpack.c.bf16 %v320_v29, %v320_v29  ;;  %v1573_v28 = vld [vmem:[%s2136_s5 + $0x10] sm:$0xff] }
  0xf0   :  { %1460 = vmatmul.msk.bf16.gmra.mxu3 %vm133_vm0, %v431_v30  ;;  %903 = vmatpush.bf16.msrb.mxu2 %v1573_v28 }
  0xf1   :  { %v348_v34 = vunpack.c.l.b16 %v328_v32  ;;  %v379_v35 = vsel %vm353_vm2, %v369_v3, %v378_v31  ;;  %v600_v3 = vrot.slane %v523_v54, 1  ;;  %v1572_v32 = vld [vmem:[%s2136_s5 + $0x8] sm:$0xff]  ;;  %s1785_s5 = smov [#allocation17]  }
  0xf2   :  { %753 = vmatpush.bf16.msra.mxu0 %v1572_v32 }
  0xf3   :  { %v476_v36 = vpack.c.b16 %v348_v34, %v347_v22  ;;  %v352_v37 = vpack.c.b16 %v348_v34, %v348_v34 }
  0xf4   :  { %1453 = vmatmul.msk.bf16.gmra.mxu2 %vm133_vm0, %v379_v35 }
  0xf5   :  { %1470 = vmatmul.msk.bf16.gmra.mxu0 %vm133_vm0, %v476_v36  ;;  %v538_v41 = vshll.u32 %v476_v36, 16  ;;  %v381_v45 = vshrl.u32 %v352_v37, 16  ;;  %v384_v46 = vshll.u32 %v352_v37, 16  ;;  %v432_v48 = vrot.slane %v352_v37, 3 }
  0xf6   :  { %v542_v57 = vshrl.u32 %v476_v36, 16  ;;  %v598_v0 = vrot.slane %v476_v36, 1 }
  0xf7   :  { %v540_v44 = vrot.slane %v538_v41, 1  ;;  %v383_v49 = vrot.slane %v381_v45, 3  ;;  %v386_v50 = vrot.slane %v384_v46, 4  ;;  %v433_v52 = vsel %vm426_vm1, %v430_v24, %v432_v48 }
  0xf8   :  { %v599_v2 = vsel %vm594_vm4, %v596_v61, %v598_v0 }
  0xf9   :  { %v541_v47 = vsel %vm524_vm3, %v537_v43, %v540_v44  ;;  %v387_v53 = vor.u32 %v386_v50, %v383_v49  ;;  %v544_v58 = vor.u32 %v542_v57, %v540_v44  ;;  %v2016_v50 = vld [vmem:[%s2140_s9] ss:$0 sm:$0xff]  ;;  %s1412_s9 = sshll.u32 %s1785_s5, 4  ;;  %s1413_s9 = int_to_ptr.vmem [resolvable:$true] %s1412_s9 }
  0xfa   :  { %1478 = vmatmul.msk.bf16.gmra.mxu1 %vm133_vm0, %v541_v47 }
  0xfb   :  { %v388_v56 = vsel %vm353_vm2, %v378_v31, %v387_v53  ;;  %v549_v60 = vsel %vm524_vm3, %v544_v58, %v548_v59 }
 0x100   :  { %1461 = vmatmul.msk.bf16.gmra.mxu3 %vm133_vm0, %v433_v52  ;;  %v2018_v52 = vld [vmem:[#allocation15] ss:$0 sm:$0xff] }
 0x101   :  { %v254_v54 = vadd.f32 %v2018_v52, %v253_v4 }
 0x104   :  { %1454 = vmatmul.msk.bf16.gmra.mxu2 %vm133_vm0, %v388_v56 }
 0x10a   :  { %1479 = vmatmul.msk.bf16.gmra.mxu1 %vm133_vm0, %v549_v60 }
 0x110   :  { %1493 = vmatmul.msk.bf16.vlgmr.msrb.gmra.mxu3 %vm133_vm0, %v1910_v12  ;;  %v601_v12 = vsel %vm594_vm4, %v598_v0, %v600_v3 }
 0x114   :  { %1486 = vmatmul.msk.bf16.vlgmr.msra.gmra.mxu2 %vm133_vm0, %v597_v63  ;;  %v695_v63 = vld [vmem:[#allocation4] sm:$0xff] }
 0x115   :  { %v703_v40 = vpack.c.bf16 %v695_v63, %v695_v63 }
 0x120   :  { %1494 = vmatmul.msk.bf16.gmra.mxu3 %vm133_vm0, %v1896_v8 }
 0x124   :  { %1487 = vmatmul.msk.bf16.gmra.mxu2 %vm133_vm0, %v599_v2 }
 0x130   :  { %1495 = vmatmul.msk.bf16.gmra.mxu3 %vm133_vm0, %v1914_v15 }
 0x134   :  { %1488 = vmatmul.msk.bf16.gmra.mxu2 %vm133_vm0, %v601_v12 }
 0x150   :  { %v501_v6 = vpop.f32.mrf.mxu0 }
 0x158   :  { %v503_v7 = vpop.f32.mrf.mxu0 }
 0x160   :  { %v506_v9 = vpop.f32.mrf.mxu0 }
 0x163   :  { %v458_v8 = vpop.f32.mrf.mxu3 }
 0x165   :  { %v574_v13 = vpop.f32.mrf.mxu1 }
 0x167   :  { %v413_v14 = vpop.f32.mrf.mxu2 }
 0x168   :  { %v459_v16 = vadd.f32 %v458_v8, %v413_v14  ;;  %v507_v20 = vpop.f32.mrf.mxu0 }
 0x16a   :  { %v514_v17 = vadd.f32 %v501_v6, %v459_v16 }
 0x16b   :  { %v460_v21 = vpop.f32.mrf.mxu3 }
 0x16c   :  { %v587_v15 = vadd.f32 %v574_v13, %v514_v17  ;;  %v771_v13 = vunpack.c.l.b16 %v703_v40 }
 0x16d   :  { %v576_v19 = vpop.f32.mrf.mxu1 }
 0x16f   :  { %v415_v22 = vpop.f32.mrf.mxu2 }
 0x170   :  { %v461_v23 = vadd.f32 %v460_v21, %v415_v22 }
 0x172   :  { %v515_v24 = vadd.f32 %v503_v7, %v461_v23  ;;  %v510_v25 = vpop.f32.mrf.mxu0 }
 0x173   :  { %v463_v26 = vpop.f32.mrf.mxu3 }
 0x174   :  { %v588_v27 = vadd.f32 %v576_v19, %v515_v24 }
 0x177   :  { %v418_v29 = vpop.f32.mrf.mxu2  ;;  %v579_v30 = vpop.f32.mrf.mxu1 }
 0x178   :  { %v263_v29 = vadd.f32 %v2018_v52, %v1999_v1 }
 0x17a   :  { %v512_v31 = vpop.f32.mrf.mxu0 }
 0x17b   :  { %v464_v34 = vpop.f32.mrf.mxu3 }
 0x17f   :  { %v419_v35 = vpop.f32.mrf.mxu2  ;;  %v580_v36 = vpop.f32.mrf.mxu1 }
 0x180   :  { %v465_v37 = vadd.f32 %v464_v34, %v419_v35 }
 0x182   :  { %v516_v38 = vadd.f32 %v507_v20, %v465_v37 }
 0x183   :  { %v467_v39 = vpop.f32.mrf.mxu3 }
 0x184   :  { %v589_v41 = vadd.f32 %v580_v36, %v516_v38 }
 0x187   :  { %v422_v42 = vpop.f32.mrf.mxu2  ;;  %v583_v43 = vpop.f32.mrf.mxu1 }
 0x188   :  { %v468_v44 = vadd.f32 %v467_v39, %v422_v42 }
 0x18a   :  { %v517_v45 = vadd.f32 %v510_v25, %v468_v44 }
 0x18b   :  { %v469_v46 = vpop.f32.mrf.mxu3 }
 0x18c   :  { %v590_v47 = vadd.f32 %v583_v43, %v517_v45 }
 0x18f   :  { %v424_v48 = vpop.f32.mrf.mxu2  ;;  %v585_v49 = vpop.f32.mrf.mxu1 }
 0x193   :  { %v668_v51 = vpop.f32.mrf.mxu3 }
 0x194   :  { %v669_v53 = vadd.f32 %v2016_v50, %v668_v51 }
 0x196   :  { %689 = vst.msk [vmem:[#allocation4 + $0x8] sm:$0xff] %vm133_vm0, %v669_v53 }
 0x197   :  { %v626_v55 = vpop.f32.mrf.mxu2 }
 0x198   :  { %v639_v56 = vadd.f32 %v626_v55, %v587_v15 }
 0x19a   :  { %v2023_v57 = vadd.f32 %v639_v56, %v254_v54 }
 0x19b   :  { %v670_v58 = vpop.f32.mrf.mxu3 }
 0x19c   :  { %v671_v59 = vadd.f32 %v2016_v50, %v670_v58 }
 0x19d   :  { %v696_v62 = vld [vmem:[#allocation4 + $0x8] sm:$0xff] }
 0x19e   :  { %690 = vst.msk [vmem:[#allocation4 + $0x10] sm:$0xff] %vm133_vm0, %v671_v59  ;;  %v704_v3 = vpack.c.bf16 %v696_v62, %v696_v62 }
 0x19f   :  { %v628_v60 = vpop.f32.mrf.mxu2 }
 0x1a0   :  { %v2027_v61 = vadd.f32 %v628_v60, %v588_v27  ;;  %v722_v9 = vunpack.c.l.b16 %v704_v3 }
 0x1a2   :  { %v772_v20 = vpack.c.b16 %v722_v9, %v771_v13 }
 0x1a3   :  { %v673_v0 = vpop.f32.mrf.mxu3 }
 0x1a4   :  { %v674_v2 = vadd.f32 %v2016_v50, %v673_v0  ;;  %v777_v23 = vshrl.u32 %v772_v20, 16  ;;  %v780_v24 = vshll.u32 %v772_v20, 16 }
 0x1a5   :  { %v697_v12 = vld [vmem:[#allocation4 + $0x10] sm:$0xff] }
 0x1a6   :  { %v685_v4 = vmul.f32 0.0, %v674_v2  ;;  %v705_v6 = vpack.c.bf16 %v697_v12, %v697_v12  ;;  %v779_v31 = vrot.slane %v777_v23, 3  ;;  %v782_v32 = vrot.slane %v780_v24, 4 }
 0x1a7   :  { %v631_v7 = vpop.f32.mrf.mxu2 }
 0x1a8   :  { %691 = vst.msk [vmem:[#allocation4 + $0x18] sm:$0xff] %vm133_vm0, %v685_v4  ;;  %v723_v8 = vunpack.c.l.b16 %v705_v6  ;;  %v783_v43 = vor.u32 %v782_v32, %v779_v31 }
 0x1aa   :  { %v728_v14 = vpack.c.b16 %v723_v8, %v722_v9  ;;  %v702_v9 = vld [vmem:[#allocation4 + $0x38] sm:$0xff] }
 0x1ab   :  { %v675_v16 = vpop.f32.mrf.mxu3  ;;  %v710_v20 = vpack.c.bf16 %v702_v9, %v702_v9 }
 0x1ac   :  { %v676_v17 = vadd.f32 %v2016_v50, %v675_v16  ;;  %1502 = vmatmul.msk.bf16.vlgmr.msra.gmra.mxu0 %vm133_vm0, %v728_v14  ;;  %v858_v36 = vshll.u32 %v728_v14, 16  ;;  %v856_v54 = vshrl.u32 %v728_v14, 16 }
 0x1ae   :  { %692 = vst.msk [vmem:[#allocation4 + $0x20] sm:$0xff] %vm133_vm0, %v676_v17  ;;  %v860_v1 = vrot.slane %v858_v36, 1  ;;  %v1575_v36 = vld [vmem:[#allocation11 + $0x8] sm:$0xff] }
 0x1af   :  { %v632_v21 = vpop.f32.mrf.mxu2  ;;  %v698_v15 = vld [vmem:[#allocation4 + $0x18] sm:$0xff]  ;;  %1006 = vmatpush.bf16.msra.mxu3 %v1575_v36 }
 0x1b0   :  { %v2034_v19 = vadd.f32 %v632_v21, %v589_v41  ;;  %v706_v22 = vpack.c.bf16 %v698_v15, %v698_v15  ;;  %v861_v59 = vor.u32 %v860_v1, %v856_v54 }
 0x1b2   :  { %v724_v25 = vunpack.c.l.b16 %v706_v22 }
 0x1b3   :  { %v678_v26 = vpop.f32.mrf.mxu3 }
 0x1b4   :  { %v679_v27 = vadd.f32 %v2016_v50, %v678_v26  ;;  %v773_v28 = vpack.c.b16 %v724_v25, %v723_v8 }
 0x1b5   :  { %v699_v30 = vld [vmem:[#allocation4 + $0x20] sm:$0xff] }
 0x1b6   :  { %693 = vst.msk [vmem:[#allocation4 + $0x28] sm:$0xff] %vm133_vm0, %v679_v27  ;;  %v707_v33 = vpack.c.bf16 %v699_v30, %v699_v30  ;;  %v785_v34 = vshrl.u32 %v773_v28, 16  ;;  %v788_v35 = vshll.u32 %v773_v28, 16 }
 0x1b7   :  { %v635_v37 = vpop.f32.mrf.mxu2 }
 0x1b8   :  { %v642_v38 = vadd.f32 %v635_v37, %v590_v47  ;;  %v725_v39 = vunpack.c.l.b16 %v707_v33  ;;  %v787_v41 = vrot.slane %v785_v34, 3  ;;  %v790_v42 = vrot.slane %v788_v35, 4  ;;  %v1574_v37 = vld [vmem:[#allocation11] sm:$0xff] }
 0x1b9   :  { %1084 = vmatpush.bf16.msrb.mxu0 %v1574_v37 }
 0x1ba   :  { %v2040_v44 = vadd.f32 %v642_v38, %v263_v29  ;;  %v729_v45 = vpack.c.b16 %v725_v39, %v724_v25  ;;  %v791_v46 = vor.u32 %v790_v42, %v787_v41  ;;  %v854_v25 = vunpack.c.l.b16 %v710_v20 }
 0x1bb   :  { %v680_v48 = vpop.f32.mrf.mxu3 }
 0x1bc   :  { %v681_v49 = vadd.f32 %v2016_v50, %v680_v48  ;;  %1503 = vmatmul.msk.bf16.gmra.mxu0 %vm133_vm0, %v729_v45  ;;  %v862_v51 = vshll.u32 %v729_v45, 16  ;;  %v792_v53 = vsel %vm353_vm2, %v783_v43, %v791_v46  ;;  %v866_v16 = vshrl.u32 %v729_v45, 16  ;;  %v2058_v43 = vld [vmem:[#allocation14] ss:$0 sm:$0xff] }
 0x1bd   :  { %v700_v55 = vld [vmem:[#allocation4 + $0x28] sm:$0xff]  ;;  %1509 = vmatmul.msk.bf16.vlgmr.msrb.gmra.mxu1 %vm133_vm0, %v792_v53  ;;  %v855_v28 = vpack.c.b16 %v854_v25, %v854_v25 }
 0x1be   :  { %v688_v47 = vmul.f32 0.0, %v681_v49  ;;  %v708_v56 = vpack.c.bf16 %v700_v55, %v700_v55  ;;  %v864_v58 = vrot.slane %v862_v51, 1  ;;  %v1578_v51 = vld [vmem:[#allocation12 + $0x8] sm:$0xff]  ;;  %v1577_v53 = vld [vmem:[#allocation12] sm:$0xff] }
 0x1bf   :  { %v637_v60 = vpop.f32.mrf.mxu2  ;;  %v877_v30 = vshll.u32 %v855_v28, 16  ;;  %1233 = vmatpush.bf16.msra.mxu2 %v1578_v51  ;;  %1311 = vmatpush.bf16.msrb.mxu3 %v1577_v53 }
 0x1c0   :  { %694 = vst.msk [vmem:[#allocation4 + $0x30] sm:$0xff] %vm133_vm0, %v688_v47  ;;  %v726_v62 = vunpack.c.l.b16 %v708_v56  ;;  %v865_v63 = vsel %vm524_vm3, %v861_v59, %v864_v58  ;;  %v868_v21 = vor.u32 %v866_v16, %v864_v58  ;;  %v1576_v59 = vld [vmem:[#allocation11 + $0x10] sm:$0xff] }
 0x1c1   :  { %1518 = vmatmul.msk.bf16.vlgmr.msrb.gmra.mxu2 %vm133_vm0, %v865_v63  ;;  %v879_v34 = vrot.slane %v877_v30, 1  ;;  %1152 = vmatpush.bf16.msra.mxu1 %v1576_v59 }
 0x1c2   :  { %v774_v50 = vpack.c.b16 %v726_v62, %v725_v39 }
 0x1c4   :  { %v794_v0 = vshrl.u32 %v774_v50, 16  ;;  %v797_v2 = vshll.u32 %v774_v50, 16 }
 0x1c6   :  { %v796_v3 = vrot.slane %v794_v0, 3  ;;  %v799_v12 = vrot.slane %v797_v2, 4 }
 0x1c7   :  { %v701_v40 = vld [vmem:[#allocation4 + $0x30] sm:$0xff] }
 0x1c8   :  { %v800_v4 = vor.u32 %v799_v12, %v796_v3  ;;  %v709_v6 = vpack.c.bf16 %v701_v40, %v701_v40  ;;  %v948_v3 = vld [vmem:[#allocation5] sm:$0xff]  ;;  %v1579_v12 = vld [vmem:[#allocation12 + $0x10] sm:$0xff] }
 0x1c9   :  { %1379 = vmatpush.bf16.msra.mxu0 %v1579_v12  ;;  %v956_v9 = vpack.c.bf16 %v948_v3, %v948_v3 }
 0x1ca   :  { %v727_v7 = vunpack.c.l.b16 %v709_v6  ;;  %v801_v8 = vsel %vm353_vm2, %v791_v46, %v800_v4 }
 0x1cc   :  { %v730_v13 = vpack.c.b16 %v727_v7, %v726_v62  ;;  %v775_v14 = vpack.c.b16 %v727_v7, %v727_v7 }
 0x1cd   :  { %1510 = vmatmul.msk.bf16.gmra.mxu1 %vm133_vm0, %v801_v8 }
 0x1ce   :  { %1504 = vmatmul.msk.bf16.gmra.mxu0 %vm133_vm0, %v730_v13  ;;  %v869_v17 = vshll.u32 %v730_v13, 16  ;;  %v803_v22 = vshrl.u32 %v775_v14, 16  ;;  %v806_v23 = vshll.u32 %v775_v14, 16  ;;  %v873_v32 = vshrl.u32 %v730_v13, 16 }
 0x1d0   :  { %v871_v15 = vrot.slane %v869_v17, 1  ;;  %v805_v26 = vrot.slane %v803_v22, 3  ;;  %v808_v27 = vrot.slane %v806_v23, 4 }
 0x1d2   :  { %v872_v24 = vsel %vm524_vm3, %v868_v21, %v871_v15  ;;  %v809_v29 = vor.u32 %v808_v27, %v805_v26  ;;  %v875_v33 = vor.u32 %v873_v32, %v871_v15  ;;  %v1022_v21 = vunpack.c.l.b16 %v956_v9  ;;  %v1175_v9 = vld [vmem:[#allocation2] sm:$0xff] }
 0x1d3   :  { %1519 = vmatmul.msk.bf16.gmra.mxu2 %vm133_vm0, %v872_v24 }
 0x1d4   :  { %v810_v31 = vsel %vm353_vm2, %v800_v4, %v809_v29  ;;  %v880_v35 = vsel %vm524_vm3, %v875_v33, %v879_v34 }
 0x1dd   :  { %1511 = vmatmul.msk.bf16.gmra.mxu1 %vm133_vm0, %v810_v31 }
 0x1e3   :  { %1520 = vmatmul.msk.bf16.gmra.mxu2 %vm133_vm0, %v880_v35 }
 0x229   :  { %v755_v39 = vpop.f32.mrf.mxu0 }
 0x231   :  { %v757_v1 = vpop.f32.mrf.mxu0 }
 0x239   :  { %v760_v58 = vpop.f32.mrf.mxu0 }
 0x23a   :  { %v835_v38 = vpop.f32.mrf.mxu1 }
 0x23b   :  { %v836_v42 = vadd.f32 %v835_v38, %v755_v39 }
 0x241   :  { %v762_v7 = vpop.f32.mrf.mxu0 }
 0x242   :  { %v837_v41 = vpop.f32.mrf.mxu1 }
 0x243   :  { %v838_v49 = vadd.f32 %v837_v41, %v757_v1 }
 0x244   :  { %v905_v45 = vpop.f32.mrf.mxu2 }
 0x245   :  { %v920_v46 = vadd.f32 %v905_v45, %v836_v42 }
 0x247   :  { %v930_v48 = vadd.f32 %v2058_v43, %v920_v46 }
 0x249   :  { %942 = vst.msk [vmem:[#allocation5 + $0x8] sm:$0xff] %vm133_vm0, %v930_v48  ;;  %v1184_v48 = vpack.c.bf16 %v1903_v10, %v1903_v10 }
 0x24a   :  { %v840_v54 = vpop.f32.mrf.mxu1 }
 0x24b   :  { %v841_v62 = vadd.f32 %v840_v54, %v760_v58  ;;  %v765_v24 = vpop.f32.mrf.mxu0 }
 0x24c   :  { %v907_v55 = vpop.f32.mrf.mxu2 }
 0x24d   :  { %v921_v47 = vadd.f32 %v907_v55, %v838_v49  ;;  %v1185_v49 = vpack.c.bf16 %v1906_v11, %v1906_v11 }
 0x24f   :  { %v931_v56 = vadd.f32 %v2058_v43, %v921_v47 }
 0x250   :  { %v949_v60 = vld [vmem:[#allocation5 + $0x8] sm:$0xff] }
 0x251   :  { %943 = vst.msk [vmem:[#allocation5 + $0x10] sm:$0xff] %vm133_vm0, %v931_v56  ;;  %v957_v2 = vpack.c.bf16 %v949_v60, %v949_v60 }
 0x252   :  { %v842_v63 = vpop.f32.mrf.mxu1 }
 0x253   :  { %v975_v13 = vunpack.c.l.b16 %v957_v2  ;;  %v843_v16 = vadd.f32 %v842_v63, %v762_v7  ;;  %v767_v1 = vpop.f32.mrf.mxu0  ;;  %v1202_v63 = vunpack.c.l.b16 %v1184_v48 }
 0x255   :  { %v1023_v25 = vpack.c.b16 %v975_v13, %v1022_v21 }
 0x256   :  { %v910_v50 = vpop.f32.mrf.mxu2 }
 0x257   :  { %v922_v0 = vadd.f32 %v910_v50, %v841_v62  ;;  %v1028_v30 = vshrl.u32 %v1023_v25, 16  ;;  %v1031_v31 = vshll.u32 %v1023_v25, 16  ;;  %v1203_v50 = vunpack.c.l.b16 %v1185_v49 }
 0x258   :  { %v950_v40 = vld [vmem:[#allocation5 + $0x10] sm:$0xff] }
 0x259   :  { %v932_v4 = vadd.f32 %v2058_v43, %v922_v0  ;;  %v958_v6 = vpack.c.bf16 %v950_v40, %v950_v40  ;;  %v1030_v38 = vrot.slane %v1028_v30, 3  ;;  %v1033_v39 = vrot.slane %v1031_v31, 4 }
 0x25a   :  { %v845_v22 = vpop.f32.mrf.mxu1  ;;  %v2079_v12 = vpack.c.b16 %v1203_v50, %v1202_v63 }
 0x25b   :  { %v938_v8 = vmul.f32 0.0, %v932_v4  ;;  %v976_v14 = vunpack.c.l.b16 %v958_v6  ;;  %v846_v27 = vadd.f32 %v845_v22, %v765_v24  ;;  %v1034_v56 = vor.u32 %v1033_v39, %v1030_v38 }
 0x25c   :  { %1546 = vmatmul.msk.bf16.vlgmr.msra.gmra.mxu2 %vm133_vm0, %v2079_v12 }
 0x25d   :  { %944 = vst.msk [vmem:[#allocation5 + $0x18] sm:$0xff] %vm133_vm0, %v938_v8  ;;  %v981_v17 = vpack.c.b16 %v976_v14, %v975_v13  ;;  %v1178_v13 = vld [vmem:[#allocation2 + $0x18] sm:$0xff] }
 0x25e   :  { %v912_v20 = vpop.f32.mrf.mxu2 }
 0x25f   :  { %v923_v15 = vadd.f32 %v912_v20, %v843_v16  ;;  %1525 = vmatmul.msk.bf16.vlgmr.msra.gmra.mxu3 %vm133_vm0, %v981_v17  ;;  %v1107_v46 = vshll.u32 %v981_v17, 16  ;;  %v1105_v11 = vshrl.u32 %v981_v17, 16  ;;  %v1183_v16 = vpack.c.bf16 %v1175_v9, %v1175_v9  ;;  %v1179_v17 = vld [vmem:[#allocation2 + $0x20] sm:$0xff] }
 0x260   :  { %v1186_v20 = vpack.c.bf16 %v1178_v13, %v1178_v13  ;;  %v1187_v22 = vpack.c.bf16 %v1179_v17, %v1179_v17 }
 0x261   :  { %v933_v23 = vadd.f32 %v2058_v43, %v923_v15  ;;  %v1109_v62 = vrot.slane %v1107_v46, 1  ;;  %v1249_v25 = vunpack.c.l.b16 %v1183_v16 }
 0x262   :  { %v847_v36 = vpop.f32.mrf.mxu1  ;;  %v1205_v30 = vunpack.c.l.b16 %v1187_v22 }
 0x263   :  { %945 = vst.msk [vmem:[#allocation5 + $0x20] sm:$0xff] %vm133_vm0, %v933_v23  ;;  %v848_v51 = vadd.f32 %v847_v36, %v767_v1  ;;  %v1110_v7 = vor.u32 %v1109_v62, %v1105_v11 }
 0x264   :  { %v951_v26 = vld [vmem:[#allocation5 + $0x18] sm:$0xff] }
 0x265   :  { %v959_v28 = vpack.c.bf16 %v951_v26, %v951_v26 }
 0x266   :  { %v915_v29 = vpop.f32.mrf.mxu2 }
 0x267   :  { %v924_v32 = vadd.f32 %v915_v29, %v846_v27  ;;  %v977_v33 = vunpack.c.l.b16 %v959_v28  ;;  %v1204_v27 = vunpack.c.l.b16 %v1186_v20 }
 0x269   :  { %v934_v34 = vadd.f32 %v2058_v43, %v924_v32  ;;  %v1024_v35 = vpack.c.b16 %v977_v33, %v976_v14  ;;  %v1250_v32 = vpack.c.b16 %v1202_v63, %v1249_v25  ;;  %v2088_v38 = vpack.c.b16 %v1205_v30, %v1204_v27 }
 0x26a   :  { %v952_v37 = vld [vmem:[#allocation5 + $0x20] sm:$0xff] }
 0x26b   :  { %946 = vst.msk [vmem:[#allocation5 + $0x28] sm:$0xff] %vm133_vm0, %v934_v34  ;;  %v960_v41 = vpack.c.bf16 %v952_v37, %v952_v37  ;;  %v1036_v42 = vshrl.u32 %v1024_v35, 16  ;;  %v1039_v45 = vshll.u32 %v1024_v35, 16  ;;  %v955_v34 = vld [vmem:[#allocation5 + $0x38] sm:$0xff]  ;;  %v1258_v46 = vshll.u32 %v1250_v32, 16 }
 0x26c   :  { %1547 = vmatmul.msk.bf16.gmra.mxu2 %vm133_vm0, %v2088_v38 }
 0x26d   :  { %v978_v53 = vunpack.c.l.b16 %v960_v41  ;;  %v1038_v54 = vrot.slane %v1036_v42, 3  ;;  %v1041_v55 = vrot.slane %v1039_v45, 4  ;;  %v1255_v42 = vshrl.u32 %v1250_v32, 16 }
 0x26e   :  { %v917_v47 = vpop.f32.mrf.mxu2  ;;  %v963_v45 = vpack.c.bf16 %v955_v34, %v955_v34 }
 0x26f   :  { %v925_v58 = vadd.f32 %v917_v47, %v848_v51  ;;  %v982_v59 = vpack.c.b16 %v978_v53, %v977_v33  ;;  %v1042_v60 = vor.u32 %v1041_v55, %v1038_v54  ;;  %v1251_v33 = vpack.c.b16 %v1204_v27, %v1203_v50  ;;  %v1180_v55 = vld [vmem:[#allocation2 + $0x28] sm:$0xff] }
 0x270   :  { %v1188_v50 = vpack.c.bf16 %v1180_v55, %v1180_v55 }
 0x271   :  { %v935_v0 = vadd.f32 %v2058_v43, %v925_v58  ;;  %1526 = vmatmul.msk.bf16.gmra.mxu3 %vm133_vm0, %v982_v59  ;;  %v1111_v10 = vshll.u32 %v982_v59, 16  ;;  %v1043_v2 = vsel %vm353_vm2, %v1034_v56, %v1042_v60  ;;  %v1115_v39 = vshrl.u32 %v982_v59, 16 }
 0x272   :  { %v953_v3 = vld [vmem:[#allocation5 + $0x28] sm:$0xff]  ;;  %1532 = vmatmul.msk.bf16.vlgmr.msrb.gmra.mxu0 %vm133_vm0, %v1043_v2  ;;  %v1263_v1 = vshrl.u32 %v1251_v33, 16  ;;  %v1266_v48 = vshll.u32 %v1251_v33, 16  ;;  %v1257_v56 = vrot.slane %v1255_v42, 3  ;;  %v1103_v58 = vunpack.c.l.b16 %v963_v45  ;;  %v1182_v42 = vld [vmem:[#allocation2 + $0x38] sm:$0xff] }
 0x273   :  { %v941_v40 = vmul.f32 0.0, %v935_v0  ;;  %v961_v4 = vpack.c.bf16 %v953_v3, %v953_v3  ;;  %v1113_v6 = vrot.slane %v1111_v10, 1  ;;  %v1260_v59 = vrot.slane %v1258_v46, 4 }
 0x274   :  { %v1265_v62 = vrot.slane %v1263_v1, 3  ;;  %v1268_v63 = vrot.slane %v1266_v48, 4  ;;  %v1104_v11 = vpack.c.b16 %v1103_v58, %v1103_v58  ;;  %v1190_v1 = vpack.c.bf16 %v1182_v42, %v1182_v42 }
 0x275   :  { %947 = vst.msk [vmem:[#allocation5 + $0x30] sm:$0xff] %vm133_vm0, %v941_v40  ;;  %v979_v43 = vunpack.c.l.b16 %v961_v4  ;;  %v1114_v8 = vsel %vm524_vm3, %v1110_v7, %v1113_v6  ;;  %v1117_v49 = vor.u32 %v1115_v39, %v1113_v6  ;;  %v1261_v3 = vor.u32 %v1260_v59, %v1257_v56 }
 0x276   :  { %1539 = vmatmul.msk.bf16.vlgmr.msra.gmra.mxu1 %vm133_vm0, %v1114_v8  ;;  %v1269_v40 = vor.u32 %v1268_v63, %v1265_v62  ;;  %v1206_v4 = vunpack.c.l.b16 %v1188_v50  ;;  %v1126_v9 = vshll.u32 %v1104_v11, 16 }
 0x277   :  { %v1025_v14 = vpack.c.b16 %v979_v43, %v978_v53 }
 0x278   :  { %v1252_v8 = vpack.c.b16 %v1206_v4, %v1205_v30  ;;  %v1128_v20 = vrot.slane %v1126_v9, 1 }
 0x279   :  { %v1045_v21 = vshrl.u32 %v1025_v14, 16  ;;  %v1048_v15 = vshll.u32 %v1025_v14, 16 }
 0x27a   :  { %v1275_v22 = vshll.u32 %v1252_v8, 16 }
 0x27b   :  { %v1047_v23 = vrot.slane %v1045_v21, 3  ;;  %v1050_v24 = vrot.slane %v1048_v15, 4  ;;  %v1334_v21 = vshll.u32 %v2079_v12, 16  ;;  %v1272_v15 = vshrl.u32 %v1252_v8, 16 }
 0x27c   :  { %v954_v26 = vld [vmem:[#allocation5 + $0x30] sm:$0xff] }
 0x27d   :  { %v1051_v28 = vor.u32 %v1050_v24, %v1047_v23  ;;  %v962_v29 = vpack.c.bf16 %v954_v26, %v954_v26  ;;  %v1332_v24 = vshrl.u32 %v2079_v12, 16  ;;  %v1336_v25 = vrot.slane %v1334_v21, 1 }
 0x27e   :  { %v1338_v26 = vshll.u32 %v2088_v38, 16  ;;  %v1274_v27 = vrot.slane %v1272_v15, 3 }
 0x27f   :  { %v980_v31 = vunpack.c.l.b16 %v962_v29  ;;  %v1052_v35 = vsel %vm353_vm2, %v1042_v60, %v1051_v28  ;;  %v1181_v60 = vld [vmem:[#allocation2 + $0x30] sm:$0xff]  ;;  %v1337_v29 = vor.u32 %v1336_v25, %v1332_v24 }
 0x280   :  { %v1189_v2 = vpack.c.bf16 %v1181_v60, %v1181_v60  ;;  %v1340_v30 = vrot.slane %v1338_v26, 1 }
 0x281   :  { %v983_v36 = vpack.c.b16 %v980_v31, %v979_v43  ;;  %v1026_v37 = vpack.c.b16 %v980_v31, %v980_v31  ;;  %v1270_v43 = vsel %vm353_vm2, %v1261_v3, %v1269_v40 }
 0x282   :  { %1533 = vmatmul.msk.bf16.gmra.mxu0 %vm133_vm0, %v1052_v35  ;;  %v1207_v7 = vunpack.c.l.b16 %v1189_v2  ;;  %v1341_v32 = vsel %vm524_vm3, %v1337_v29, %v1340_v30 }
 0x283   :  { %1527 = vmatmul.msk.bf16.gmra.mxu3 %vm133_vm0, %v983_v36  ;;  %v1118_v41 = vshll.u32 %v983_v36, 16  ;;  %v1054_v53 = vshrl.u32 %v1026_v37, 16  ;;  %v1057_v54 = vshll.u32 %v1026_v37, 16  ;;  %v1122_v13 = vshrl.u32 %v983_v36, 16 }
 0x284   :  { %v1210_v16 = vpack.c.b16 %v1207_v7, %v1206_v4  ;;  %v1253_v34 = vpack.c.b16 %v1207_v7, %v1207_v7  ;;  %v1342_v36 = vshrl.u32 %v2088_v38, 16 }
 0x285   :  { %v1120_v51 = vrot.slane %v1118_v41, 1  ;;  %v1056_v0 = vrot.slane %v1054_v53, 3  ;;  %v1059_v10 = vrot.slane %v1057_v54, 4 }
 0x286   :  { %1548 = vmatmul.msk.bf16.gmra.mxu2 %vm133_vm0, %v1210_v16  ;;  %v1281_v12 = vshrl.u32 %v1253_v34, 16  ;;  %v1284_v35 = vshll.u32 %v1253_v34, 16  ;;  %v1345_v37 = vshll.u32 %v1210_v16, 16  ;;  %v1344_v45 = vor.u32 %v1342_v36, %v1340_v30 }
 0x287   :  { %v1121_v47 = vsel %vm524_vm3, %v1117_v49, %v1120_v51  ;;  %v1060_v6 = vor.u32 %v1059_v10, %v1056_v0  ;;  %v1124_v17 = vor.u32 %v1122_v13, %v1120_v51  ;;  %v1330_v51 = vunpack.c.l.b16 %v1190_v1 }
 0x288   :  { %1540 = vmatmul.msk.bf16.gmra.mxu1 %vm133_vm0, %v1121_v47  ;;  %v1283_v39 = vrot.slane %v1281_v12, 3  ;;  %v1286_v41 = vrot.slane %v1284_v35, 4  ;;  %v1347_v46 = vrot.slane %v1345_v37, 1  ;;  %v1349_v55 = vshrl.u32 %v1210_v16, 16 }
 0x289   :  { %v1061_v14 = vsel %vm353_vm2, %v1051_v28, %v1060_v6  ;;  %v1129_v23 = vsel %vm524_vm3, %v1124_v17, %v1128_v20  ;;  %v1277_v28 = vrot.slane %v1275_v22, 4  ;;  %v1331_v54 = vpack.c.b16 %v1330_v51, %v1330_v51 }
 0x28a   :  { %v1287_v48 = vor.u32 %v1286_v41, %v1283_v39  ;;  %v1348_v49 = vsel %vm524_vm3, %v1344_v45, %v1347_v46  ;;  %v1351_v47 = vor.u32 %v1349_v55, %v1347_v46  ;;  %v256_v30 = vadd.f32 %v2018_v52, %v2002_v5 }
 0x28b   :  { %v1278_v31 = vor.u32 %v1277_v28, %v1274_v27  ;;  %v1353_v38 = vshll.u32 %v1331_v54, 16  ;;  %v260_v5 = vadd.f32 %v2018_v52, %v1927_v18 }
 0x28c   :  { %v644_v34 = vadd.f32 %v2027_v61, %v256_v30 }
 0x28d   :  { %v1279_v33 = vsel %vm353_vm2, %v1269_v40, %v1278_v31  ;;  %v1288_v53 = vsel %vm353_vm2, %v1278_v31, %v1287_v48  ;;  %v1355_v56 = vrot.slane %v1353_v38, 1  ;;  %v645_v1 = vadd.f32 %v2034_v19, %v260_v5 }
 0x28f   :  { %v1356_v58 = vsel %vm524_vm3, %v1351_v47, %v1355_v56 }
 0x292   :  { %1534 = vmatmul.msk.bf16.gmra.mxu0 %vm133_vm0, %v1061_v14 }
 0x293   :  { %1553 = vmatmul.msk.bf16.vlgmr.msrb.gmra.mxu3 %vm133_vm0, %v1270_v43 }
 0x298   :  { %1541 = vmatmul.msk.bf16.gmra.mxu1 %vm133_vm0, %v1129_v23 }
 0x2a2   :  { %1560 = vmatmul.msk.bf16.vlgmr.msra.gmra.mxu0 %vm133_vm0, %v1341_v32 }
 0x2a3   :  { %1554 = vmatmul.msk.bf16.gmra.mxu3 %vm133_vm0, %v1279_v33 }
 0x2b2   :  { %1561 = vmatmul.msk.bf16.gmra.mxu0 %vm133_vm0, %v1348_v49 }
 0x2b3   :  { %1555 = vmatmul.msk.bf16.gmra.mxu3 %vm133_vm0, %v1288_v53 }
 0x2c2   :  { %1562 = vmatmul.msk.bf16.gmra.mxu0 %vm133_vm0, %v1356_v58 }
 0x2df   :  { %v1235_v10 = vpop.f32.mrf.mxu2 }
 0x2e2   :  { %v1008_v60 = vpop.f32.mrf.mxu3 }
 0x2e7   :  { %v1237_v40 = vpop.f32.mrf.mxu2 }
 0x2ea   :  { %v1010_v59 = vpop.f32.mrf.mxu3 }
 0x2ef   :  { %v1086_v62 = vpop.f32.mrf.mxu0  ;;  %v1240_v9 = vpop.f32.mrf.mxu2 }
 0x2f0   :  { %v1087_v15 = vadd.f32 %v1086_v62, %v1008_v60 }
 0x2f3   :  { %v1154_v63 = vpop.f32.mrf.mxu1 }
 0x2f4   :  { %v1013_v50 = vpop.f32.mrf.mxu3  ;;  %v1167_v22 = vadd.f32 %v1154_v63, %v1087_v15 }
 0x2f6   :  { %v1171_v27 = vadd.f32 %v1167_v22, %v2023_v57 }
 0x2f7   :  { %v1088_v0 = vpop.f32.mrf.mxu0  ;;  %v1241_v14 = vpop.f32.mrf.mxu2 }
 0x2f8   :  { %v1089_v31 = vadd.f32 %v1088_v0, %v1010_v59 }
 0x2fb   :  { %v1156_v2 = vpop.f32.mrf.mxu1 }
 0x2fc   :  { %v1014_v11 = vpop.f32.mrf.mxu3  ;;  %v1168_v33 = vadd.f32 %v1156_v2, %v1089_v31 }
 0x2fe   :  { %v1172_v37 = vadd.f32 %v1168_v33, %v644_v34 }
 0x2ff   :  { %v1091_v3 = vpop.f32.mrf.mxu0 }
 0x305   :  { %v1159_v4 = vpop.f32.mrf.mxu1 }
 0x306   :  { %v1017_v6 = vpop.f32.mrf.mxu3 }
 0x307   :  { %v1092_v7 = vpop.f32.mrf.mxu0 }
 0x308   :  { %v1093_v45 = vadd.f32 %v1092_v7, %v1014_v11 }
 0x309   :  { %v1244_v21 = vpop.f32.mrf.mxu2 }
 0x30d   :  { %v1160_v43 = vpop.f32.mrf.mxu1 }
 0x30e   :  { %v1019_v8 = vpop.f32.mrf.mxu3  ;;  %v1169_v46 = vadd.f32 %v1160_v43, %v1093_v45 }
 0x30f   :  { %v1095_v13 = vpop.f32.mrf.mxu0 }
 0x310   :  { %v1173_v51 = vadd.f32 %v1169_v46, %v645_v1  ;;  %v1096_v54 = vadd.f32 %v1095_v13, %v1017_v6 }
 0x311   :  { %v1246_v29 = vpop.f32.mrf.mxu2 }
 0x315   :  { %v1163_v16 = vpop.f32.mrf.mxu1 }
 0x316   :  { %v1313_v17 = vpop.f32.mrf.mxu3  ;;  %v1170_v38 = vadd.f32 %v1163_v16, %v1096_v54 }
 0x317   :  { %v1097_v20 = vpop.f32.mrf.mxu0  ;;  %v1314_v23 = vadd.f32 %v1313_v17, %v1235_v10 }
 0x318   :  { %v1174_v52 = vadd.f32 %v1170_v38, %v2040_v44 }
 0x31d   :  { %v1165_v24 = vpop.f32.mrf.mxu1 }
 0x31e   :  { %v1315_v25 = vpop.f32.mrf.mxu3 }
 0x31f   :  { %v1381_v26 = vpop.f32.mrf.mxu0  ;;  %v1316_v12 = vadd.f32 %v1315_v25, %v1237_v40 }
 0x320   :  { %v1394_v28 = vadd.f32 %v1381_v26, %v1314_v23 }
 0x322   :  { %v1398_v32 = vadd.f32 %v1394_v28, %v1171_v27 }
 0x324   :  { %1403 = vst.msk [vmem:[#allocation17] sm:$0xff] %vm1402_vm5, %v1398_v32 }
 0x326   :  { %v1318_v35 = vpop.f32.mrf.mxu3 }
 0x327   :  { %v1383_v36 = vpop.f32.mrf.mxu0 }
 0x328   :  { %v1395_v39 = vadd.f32 %v1383_v36, %v1316_v12 }
 0x32a   :  { %v1399_v41 = vadd.f32 %v1395_v39, %v1172_v37 }
 0x32c   :  { %1404 = vst.msk [vmem:[#allocation17 + $0x8] sm:$0xff] %vm1402_vm5, %v1399_v41 }
 0x32e   :  { %v1319_v57 = vpop.f32.mrf.mxu3 }
 0x32f   :  { %v1386_v42 = vpop.f32.mrf.mxu0  ;;  %v1320_v48 = vadd.f32 %v1319_v57, %v1241_v14 }
 0x336   :  { %v1322_v49 = vpop.f32.mrf.mxu3 }
 0x337   :  { %v1387_v61 = vpop.f32.mrf.mxu0  ;;  %v1323_v47 = vadd.f32 %v1322_v49, %v1244_v21 }
 0x338   :  { %v1396_v53 = vadd.f32 %v1387_v61, %v1320_v48 }
 0x33a   :  { %v1400_v55 = vadd.f32 %v1396_v53, %v1173_v51 }
 0x33c   :  { %1406 = vst.msk [vmem:[#allocation17 + $0x10] sm:$0xff] %vm1402_vm5, %v1400_v55 }
 0x33e   :  { %v1324_v56 = vpop.f32.mrf.mxu3 }
 0x33f   :  { %v1390_v18 = vpop.f32.mrf.mxu0 }
 0x340   :  { %v1397_v19 = vadd.f32 %v1390_v18, %v1323_v47 }
 0x342   :  { %v1401_v58 = vadd.f32 %v1397_v19, %v1174_v52 }
 0x344   :  { %1407 = vst.msk [vmem:[#allocation17 + $0x18] sm:$0xff] %vm1402_vm5, %v1401_v58 }
 0x345   :  { %1420 = dma.vmem_to_hbm [thread:$0]  %s1413_s9, 512, %s1415_s15, [#allocation8], %s1786_s16, %s1786_s16, %s1787_s1  }
 0x347   :  { %v1392_v60 = vpop.f32.mrf.mxu0 }
 0x348   :  { %1774 = dma.done.wait [#allocation8], 512  }
 0x349   :  { %1775 = vsyncadd [#allocation8], 4294966784 }
 0x34a   :  { %1425 = vsyncpa [#allocation7], 1 }
 0x34b   :  { %1426 = vsyncpa [#allocation10], 1 }
 0x34c   :  { %1427 = vsyncpa [#allocation13], 1 }
 0x34d   :  { %1428 = vsyncpa [#allocation16], 1 }
 0x34e   :  { %1429 = vsyncpa [#allocation8], 1 }

</bundles_post_ra>
